<compile_context>
chip_gen: v6e
topology: v6e:2x2x1
jax: 0.10.0
libtpu: 0.0.40
codegen_flags: <defaults>
</compile_context>

<pallas_src>
import jax
import jax.numpy as jnp
from jax import lax
from jax.experimental import pallas as pl
from jax.experimental.pallas import tpu as pltpu

# Problem sizes (small, consistent with the module: n_in_feat=4, n_out_feat=8)
N, C_IN, C_OUT, H, W = 2, 4, 8, 16, 16
HO, WO = H // 2, W // 2
HW = H * W
NHW = N * H * W            # 512 (lane axis for all in-kernel compute)
EPS = 1e-5

# Bit-trick index math is only valid for power-of-two H, W (guarded, shifts derived).
assert H & (H - 1) == 0 and W & (W - 1) == 0
LOG2_W = W.bit_length() - 1


def _encoder_kernel(x_ref, w1_ref, w2_ref, b_ref, pooled_ref, idx_ref):
    f32 = jnp.float32

    # flat lane -> (h, w) within an image; one (1, NHW) iota shared by masks & indices
    lane = lax.broadcasted_iota(jnp.int32, (1, NHW), 1)
    w_pos = lane & (W - 1)
    h_pos = (lane >> LOG2_W) & (H - 1)

    one, zero = jnp.float32(1.0), jnp.float32(0.0)
    # 4 hoisted base border masks (f32 0/1), shared by conv1 and conv2
    h_ok_m = jnp.where(h_pos >= 1, one, zero)        # tap dy == -1 in range
    h_ok_p = jnp.where(h_pos <= H - 2, one, zero)    # tap dy == +1 in range
    w_ok_m = jnp.where(w_pos >= 1, one, zero)        # tap dx == -1 in range
    w_ok_p = jnp.where(w_pos <= W - 2, one, zero)    # tap dx == +1 in range

    def tap_mask(dy, dx):
        m = None
        if dy == -1:
            m = h_ok_m
        elif dy == 1:
            m = h_ok_p
        if dx == -1:
            m = w_ok_m if m is None else m * w_ok_m
        elif dx == 1:
            m = w_ok_p if m is None else m * w_ok_p
        return m                                      # None for the center tap

    def conv3x3(src, w_ref):
        # src: (C_src, NHW); w_ref: (9, C_OUT, C_src), tap index t = ky*3 + kx.
        acc = None
        for ky in range(3):
            dy = ky - 1
            for kx in range(3):
                dx = kx - 1
                shift = dy * W + dx
                # output[l] = src[l + dy*W + dx]  (wrapped lanes are masked to 0)
                shifted = src if shift == 0 else jnp.roll(src, -shift, axis=1)
                m = tap_mask(dy, dx)
                tap = shifted if m is None else shifted * m
                c = jnp.dot(w_ref[ky * 3 + kx], tap, preferred_element_type=f32)
                acc = c if acc is None else acc + c
        return acc

    b1 = b_ref[:, 0:1]                                # (C_OUT, 1)
    b2 = b_ref[:, 1:2]

    # conv1 (BN scale folded into weights) + bias + ReLU
    y1 = jnp.maximum(conv3x3(x_ref[...], w1_ref) + b1, 0.0)      # (C_OUT, NHW)
    # conv2 + bias + ReLU
    y2 = jnp.maximum(conv3x3(y1, w2_ref) + b2, 0.0)              # (C_OUT, NHW)

    # ---------------- max_pool2d(2, 2) via lane rolls (bit-exact values) -------------
    # At lanes with even h and even w (the only ones the wrapper keeps) the other three
    # 2x2-window corners sit at lane offsets +1, +W, +W+1 inside the same image plane.
    c01 = jnp.roll(y2, -1, axis=1)
    c10 = jnp.roll(y2, -W, axis=1)
    c11 = jnp.roll(y2, -(W + 1), axis=1)

    # strict '>' keeps the earliest candidate on ties (PyTorch row-major scan order)
    best = y2
    off = jnp.zeros((C_OUT, NHW), jnp.int32)
    for cand, o in ((c01, 1), (c10, W), (c11, W + 1)):
        upd = cand > best
        off = jnp.where(upd, jnp.int32(o), off)
        best = jnp.where(upd, cand, best)

    plane = lane & (HW - 1)                           # h*W + w  (top-left corner index)
    pooled_ref[...] = best
    idx_ref[...] = plane + off


def encoder_forward(x_nchw, w1, scale1, bias1, w2, scale2, bias2):
    """Mirrors Encoder.forward: returns ((pooled, indices), output_size)."""
    f32 = jnp.float32

    # lane-dense input: (C_IN, N*H*W), lane = n*H*W + h*W + w
    x = jnp.transpose(x_nchw.astype(f32), (1, 0, 2, 3)).reshape(C_IN, NHW)

    # Fold BN scales into conv weights; arrange per-tap: (9, C_OUT, C_src), t = ky*3+kx
    w1s = w1.astype(f32) * scale1.astype(f32)[:, None, None, None]
    w2s = w2.astype(f32) * scale2.astype(f32)[:, None, None, None]
    w1k = jnp.transpose(w1s, (2, 3, 0, 1)).reshape(9, C_OUT, C_IN)
    w2k = jnp.transpose(w2s, (2, 3, 0, 1)).reshape(9, C_OUT, C_OUT)

    # Pack the two per-channel bias vectors into a single small input
    biases = jnp.stack([bias1.astype(f32), bias2.astype(f32)], axis=1)   # (C_OUT, 2)

    def spec(shape):
        return pl.BlockSpec(shape, lambda i, _s=shape: (0,) * len(_s))

    pooled_dense, idx_dense = pl.pallas_call(
        _encoder_kernel,
        out_shape=(jax.ShapeDtypeStruct((C_OUT, NHW), jnp.float32),
                   jax.ShapeDtypeStruct((C_OUT, NHW), jnp.int32)),
        grid=(1,),
        in_specs=[
            spec((C_IN, NHW)),          # x   (lane-dense)
            spec((9, C_OUT, C_IN)),     # w1  (scale-folded, per-tap)
            spec((9, C_OUT, C_OUT)),    # w2  (scale-folded, per-tap)
            spec((C_OUT, 2)),           # packed biases
        ],
        out_specs=[spec((C_OUT, NHW)), spec((C_OUT, NHW))],
        compiler_params=pltpu.CompilerParams(dimension_semantics=("arbitrary",)),
    )(x, w1k, w2k, biases)

    # dense (C, N*H*W) -> NCHW with stride-2 subsample (free layout plumbing in XLA)
    pooled = jnp.transpose(
        pooled_dense.reshape(C_OUT, N, H, W)[:, :, ::2, ::2], (1, 0, 2, 3))
    idx = jnp.transpose(
        idx_dense.reshape(C_OUT, N, H, W)[:, :, ::2, ::2], (1, 0, 2, 3))
    out_size = (N, C_OUT, H, W)   # output.size() before pooling, as in the PyTorch forward
    return (pooled, idx), out_size


if __name__ == "__main__":
    key = jax.random.PRNGKey(0)
    ks = jax.random.split(key, 16)

    # deterministic input (PyTorch NCHW convention)
    x = jax.random.normal(ks[0], (N, C_IN, H, W), jnp.float32)

    # deterministic synthetic parameters (PyTorch shapes)
    w1 = 0.2 * jax.random.normal(ks[1], (C_OUT, C_IN, 3, 3), jnp.float32)
    bconv1 = 0.1 * jax.random.normal(ks[2], (C_OUT,), jnp.float32)
    gamma1 = 1.0 + 0.1 * jax.random.normal(ks[3], (C_OUT,), jnp.float32)
    beta1 = 0.1 * jax.random.normal(ks[4], (C_OUT,), jnp.float32)
    mean1 = 0.1 * jax.random.normal(ks[5], (C_OUT,), jnp.float32)
    var1 = 0.5 + jnp.abs(jax.random.normal(ks[6], (C_OUT,), jnp.float32))

    w2 = 0.2 * jax.random.normal(ks[7], (C_OUT, C_OUT, 3, 3), jnp.float32)
    bconv2 = 0.1 * jax.random.normal(ks[8], (C_OUT,), jnp.float32)
    gamma2 = 1.0 + 0.1 * jax.random.normal(ks[9], (C_OUT,), jnp.float32)
    beta2 = 0.1 * jax.random.normal(ks[10], (C_OUT,), jnp.float32)
    mean2 = 0.1 * jax.random.normal(ks[11], (C_OUT,), jnp.float32)
    var2 = 0.5 + jnp.abs(jax.random.normal(ks[12], (C_OUT,), jnp.float32))

    # fold conv-bias + BN (inference mode) into per-channel scale / bias
    scale1 = gamma1 / jnp.sqrt(var1 + EPS)
    bias1 = beta1 + (bconv1 - mean1) * scale1
    scale2 = gamma2 / jnp.sqrt(var2 + EPS)
    bias2 = beta2 + (bconv2 - mean2) * scale2

    (pooled, idx), out_size = encoder_forward(x, w1, scale1, bias1, w2, scale2, bias2)
    jax.block_until_ready((pooled, idx))

    # ---------------- pure-JAX reference check ----------------
    def conv_bn_relu(xh, w, scale, bias):
        y = lax.conv_general_dilated(xh, jnp.transpose(w, (2, 3, 1, 0)),
                                     (1, 1), 'SAME',
                                     dimension_numbers=('NHWC', 'HWIO', 'NHWC'))
        return jnp.maximum(y * scale + bias, 0.0)

    xh = jnp.transpose(x, (0, 2, 3, 1))
    y = conv_bn_relu(xh, w1, scale1, bias1)
    y = conv_bn_relu(y, w2, scale2, bias2)
    pooled_ref = lax.reduce_window(y, -jnp.inf, lax.max,
                                   (1, 2, 2, 1), (1, 2, 2, 1), 'VALID')
    pooled_ref = jnp.transpose(pooled_ref, (0, 3, 1, 2))
    assert pooled.shape == (N, C_OUT, HO, WO)
    assert jnp.allclose(pooled, pooled_ref, atol=1e-4), \
        float(jnp.max(jnp.abs(pooled - pooled_ref)))

    # indices must point at the max element of each (n, c) plane (flat h*W + w)
    y_flat = jnp.transpose(y, (0, 3, 1, 2)).reshape(N, C_OUT, H * W)
    gathered = jnp.take_along_axis(y_flat, idx.reshape(N, C_OUT, HO * WO),
                                   axis=2).reshape(N, C_OUT, HO, WO)
    assert jnp.allclose(gathered, pooled, atol=1e-5)
    assert out_size == (N, C_OUT, H, W)

    print("KERNEL_OK")
</pallas_src>

<mosaic_0001>
module attributes {stable_mosaic.version = 11 : i64} {
  func.func @_encoder_kernel(%arg0: i32, %arg1: memref<4x512xf32, #tpu.memory_space<vmem>>, %arg2: memref<9x8x4xf32, #tpu.memory_space<vmem>>, %arg3: memref<9x8x8xf32, #tpu.memory_space<vmem>>, %arg4: memref<8x2xf32, #tpu.memory_space<vmem>>, %arg5: memref<8x512xf32, #tpu.memory_space<vmem>>, %arg6: memref<8x512xi32, #tpu.memory_space<vmem>>) attributes {dimension_semantics = [#tpu.dimension_semantics<arbitrary>], iteration_bounds = array<i64: 1>, scalar_prefetch = 0 : i64, scratch_operands = 0 : i64, tpu.core_type = #tpu.core_type<tc>, window_params = [{pipeline_mode = #tpu.pipeline_mode<synchronous>, transform_indices = @transform_0, window_bounds = array<i64: 4, 512>}, {pipeline_mode = #tpu.pipeline_mode<synchronous>, transform_indices = @transform_1, window_bounds = array<i64: 9, 8, 4>}, {pipeline_mode = #tpu.pipeline_mode<synchronous>, transform_indices = @transform_2, window_bounds = array<i64: 9, 8, 8>}, {pipeline_mode = #tpu.pipeline_mode<synchronous>, transform_indices = @transform_3, window_bounds = array<i64: 8, 2>}, {pipeline_mode = #tpu.pipeline_mode<synchronous>, transform_indices = @transform_4, window_bounds = array<i64: 8, 512>}, {pipeline_mode = #tpu.pipeline_mode<synchronous>, transform_indices = @transform_5, window_bounds = array<i64: 8, 512>}]} {
    %0 = tpu.iota {dimensions = array<i32: 1>} : vector<1x512xi32>
    %c15_i32 = arith.constant 15 : i32
    %1 = vector.broadcast %c15_i32 : i32 to vector<1x512xi32>
    %2 = arith.andi %0, %1 : vector<1x512xi32>
    %c4_i32 = arith.constant 4 : i32
    %3 = vector.broadcast %c4_i32 : i32 to vector<1x512xi32>
    %4 = arith.shrsi %0, %3 : vector<1x512xi32>
    %c15_i32_0 = arith.constant 15 : i32
    %5 = vector.broadcast %c15_i32_0 : i32 to vector<1x512xi32>
    %6 = arith.andi %4, %5 : vector<1x512xi32>
    %c1_i32 = arith.constant 1 : i32
    %7 = vector.broadcast %c1_i32 : i32 to vector<1x512xi32>
    %8 = arith.cmpi sge, %6, %7 : vector<1x512xi32>
    %cst = arith.constant 1.000000e+00 : f32
    %cst_1 = arith.constant 0.000000e+00 : f32
    %9 = vector.broadcast %cst : f32 to vector<1x512xf32>
    %10 = vector.broadcast %cst_1 : f32 to vector<1x512xf32>
    %11 = arith.select %8, %9, %10 : vector<1x512xi1>, vector<1x512xf32>
    %c14_i32 = arith.constant 14 : i32
    %12 = vector.broadcast %c14_i32 : i32 to vector<1x512xi32>
    %13 = arith.cmpi sle, %6, %12 : vector<1x512xi32>
    %cst_2 = arith.constant 1.000000e+00 : f32
    %cst_3 = arith.constant 0.000000e+00 : f32
    %14 = vector.broadcast %cst_2 : f32 to vector<1x512xf32>
    %15 = vector.broadcast %cst_3 : f32 to vector<1x512xf32>
    %16 = arith.select %13, %14, %15 : vector<1x512xi1>, vector<1x512xf32>
    %c1_i32_4 = arith.constant 1 : i32
    %17 = vector.broadcast %c1_i32_4 : i32 to vector<1x512xi32>
    %18 = arith.cmpi sge, %2, %17 : vector<1x512xi32>
    %cst_5 = arith.constant 1.000000e+00 : f32
    %cst_6 = arith.constant 0.000000e+00 : f32
    %19 = vector.broadcast %cst_5 : f32 to vector<1x512xf32>
    %20 = vector.broadcast %cst_6 : f32 to vector<1x512xf32>
    %21 = arith.select %18, %19, %20 : vector<1x512xi1>, vector<1x512xf32>
    %c14_i32_7 = arith.constant 14 : i32
    %22 = vector.broadcast %c14_i32_7 : i32 to vector<1x512xi32>
    %23 = arith.cmpi sle, %2, %22 : vector<1x512xi32>
    %cst_8 = arith.constant 1.000000e+00 : f32
    %cst_9 = arith.constant 0.000000e+00 : f32
    %24 = vector.broadcast %cst_8 : f32 to vector<1x512xf32>
    %25 = vector.broadcast %cst_9 : f32 to vector<1x512xf32>
    %26 = arith.select %23, %24, %25 : vector<1x512xi1>, vector<1x512xf32>
    %c0 = arith.constant 0 : index
    %c0_10 = arith.constant 0 : index
    %27 = vector.load %arg4[%c0, %c0_10] : memref<8x2xf32, #tpu.memory_space<vmem>>, vector<8x1xf32>
    %c0_11 = arith.constant 0 : index
    %c1 = arith.constant 1 : index
    %28 = vector.load %arg4[%c0_11, %c1] : memref<8x2xf32, #tpu.memory_space<vmem>>, vector<8x1xf32>
    %c0_12 = arith.constant 0 : index
    %c0_13 = arith.constant 0 : index
    %29 = vector.load %arg1[%c0_12, %c0_13] : memref<4x512xf32, #tpu.memory_space<vmem>>, vector<4x512xf32>
    %30 = vector.extract_strided_slice %29 {offsets = [0, 495], sizes = [4, 17], strides = [1, 1]} : vector<4x512xf32> to vector<4x17xf32>
    %31 = vector.extract_strided_slice %29 {offsets = [0, 0], sizes = [4, 495], strides = [1, 1]} : vector<4x512xf32> to vector<4x495xf32>
    %32 = tpu.concatenate %30, %31 in 1 : vector<4x17xf32>, vector<4x495xf32> -> vector<4x512xf32>
    %33 = arith.mulf %11, %21 : vector<1x512xf32>
    %34 = vector.broadcast %33 : vector<1x512xf32> to vector<4x512xf32>
    %35 = arith.mulf %32, %34 : vector<4x512xf32>
    %c0_14 = arith.constant 0 : index
    %c0_15 = arith.constant 0 : index
    %c0_16 = arith.constant 0 : index
    %36 = vector.load %arg2[%c0_14, %c0_15, %c0_16] : memref<9x8x4xf32, #tpu.memory_space<vmem>>, vector<1x8x4xf32>
    %37 = vector.shape_cast %36 : vector<1x8x4xf32> to vector<8x4xf32>
    %cst_17 = arith.constant dense<0.000000e+00> : vector<8x512xf32>
    %38 = tpu.matmul %37, %35, %cst_17 {dimension_numbers = #tpu.dot_dimension_numbers<[1], [0], [0], [1], [0, 0, 1, 1], [], []>} : vector<8x4xf32>, vector<4x512xf32>, vector<8x512xf32> -> vector<8x512xf32>
    %39 = vector.extract_strided_slice %29 {offsets = [0, 496], sizes = [4, 16], strides = [1, 1]} : vector<4x512xf32> to vector<4x16xf32>
    %40 = vector.extract_strided_slice %29 {offsets = [0, 0], sizes = [4, 496], strides = [1, 1]} : vector<4x512xf32> to vector<4x496xf32>
    %41 = tpu.concatenate %39, %40 in 1 : vector<4x16xf32>, vector<4x496xf32> -> vector<4x512xf32>
    %42 = vector.broadcast %11 : vector<1x512xf32> to vector<4x512xf32>
    %43 = arith.mulf %41, %42 : vector<4x512xf32>
    %c1_18 = arith.constant 1 : index
    %c0_19 = arith.constant 0 : index
    %c0_20 = arith.constant 0 : index
    %44 = vector.load %arg2[%c1_18, %c0_19, %c0_20] : memref<9x8x4xf32, #tpu.memory_space<vmem>>, vector<1x8x4xf32>
    %45 = vector.shape_cast %44 : vector<1x8x4xf32> to vector<8x4xf32>
    %cst_21 = arith.constant dense<0.000000e+00> : vector<8x512xf32>
    %46 = tpu.matmul %45, %43, %cst_21 {dimension_numbers = #tpu.dot_dimension_numbers<[1], [0], [0], [1], [0, 0, 1, 1], [], []>} : vector<8x4xf32>, vector<4x512xf32>, vector<8x512xf32> -> vector<8x512xf32>
    %47 = arith.addf %38, %46 : vector<8x512xf32>
    %48 = vector.extract_strided_slice %29 {offsets = [0, 497], sizes = [4, 15], strides = [1, 1]} : vector<4x512xf32> to vector<4x15xf32>
    %49 = vector.extract_strided_slice %29 {offsets = [0, 0], sizes = [4, 497], strides = [1, 1]} : vector<4x512xf32> to vector<4x497xf32>
    %50 = tpu.concatenate %48, %49 in 1 : vector<4x15xf32>, vector<4x497xf32> -> vector<4x512xf32>
    %51 = arith.mulf %11, %26 : vector<1x512xf32>
    %52 = vector.broadcast %51 : vector<1x512xf32> to vector<4x512xf32>
    %53 = arith.mulf %50, %52 : vector<4x512xf32>
    %c2 = arith.constant 2 : index
    %c0_22 = arith.constant 0 : index
    %c0_23 = arith.constant 0 : index
    %54 = vector.load %arg2[%c2, %c0_22, %c0_23] : memref<9x8x4xf32, #tpu.memory_space<vmem>>, vector<1x8x4xf32>
    %55 = vector.shape_cast %54 : vector<1x8x4xf32> to vector<8x4xf32>
    %cst_24 = arith.constant dense<0.000000e+00> : vector<8x512xf32>
    %56 = tpu.matmul %55, %53, %cst_24 {dimension_numbers = #tpu.dot_dimension_numbers<[1], [0], [0], [1], [0, 0, 1, 1], [], []>} : vector<8x4xf32>, vector<4x512xf32>, vector<8x512xf32> -> vector<8x512xf32>
    %57 = arith.addf %47, %56 : vector<8x512xf32>
    %58 = vector.extract_strided_slice %29 {offsets = [0, 511], sizes = [4, 1], strides = [1, 1]} : vector<4x512xf32> to vector<4x1xf32>
    %59 = vector.extract_strided_slice %29 {offsets = [0, 0], sizes = [4, 511], strides = [1, 1]} : vector<4x512xf32> to vector<4x511xf32>
    %60 = tpu.concatenate %58, %59 in 1 : vector<4x1xf32>, vector<4x511xf32> -> vector<4x512xf32>
    %61 = vector.broadcast %21 : vector<1x512xf32> to vector<4x512xf32>
    %62 = arith.mulf %60, %61 : vector<4x512xf32>
    %c3 = arith.constant 3 : index
    %c0_25 = arith.constant 0 : index
    %c0_26 = arith.constant 0 : index
    %63 = vector.load %arg2[%c3, %c0_25, %c0_26] : memref<9x8x4xf32, #tpu.memory_space<vmem>>, vector<1x8x4xf32>
    %64 = vector.shape_cast %63 : vector<1x8x4xf32> to vector<8x4xf32>
    %cst_27 = arith.constant dense<0.000000e+00> : vector<8x512xf32>
    %65 = tpu.matmul %64, %62, %cst_27 {dimension_numbers = #tpu.dot_dimension_numbers<[1], [0], [0], [1], [0, 0, 1, 1], [], []>} : vector<8x4xf32>, vector<4x512xf32>, vector<8x512xf32> -> vector<8x512xf32>
    %66 = arith.addf %57, %65 : vector<8x512xf32>
    %c4 = arith.constant 4 : index
    %c0_28 = arith.constant 0 : index
    %c0_29 = arith.constant 0 : index
    %67 = vector.load %arg2[%c4, %c0_28, %c0_29] : memref<9x8x4xf32, #tpu.memory_space<vmem>>, vector<1x8x4xf32>
    %68 = vector.shape_cast %67 : vector<1x8x4xf32> to vector<8x4xf32>
    %cst_30 = arith.constant dense<0.000000e+00> : vector<8x512xf32>
    %69 = tpu.matmul %68, %29, %cst_30 {dimension_numbers = #tpu.dot_dimension_numbers<[1], [0], [0], [1], [0, 0, 1, 1], [], []>} : vector<8x4xf32>, vector<4x512xf32>, vector<8x512xf32> -> vector<8x512xf32>
    %70 = arith.addf %66, %69 : vector<8x512xf32>
    %71 = vector.extract_strided_slice %29 {offsets = [0, 1], sizes = [4, 511], strides = [1, 1]} : vector<4x512xf32> to vector<4x511xf32>
    %72 = vector.extract_strided_slice %29 {offsets = [0, 0], sizes = [4, 1], strides = [1, 1]} : vector<4x512xf32> to vector<4x1xf32>
    %73 = tpu.concatenate %71, %72 in 1 : vector<4x511xf32>, vector<4x1xf32> -> vector<4x512xf32>
    %74 = vector.broadcast %26 : vector<1x512xf32> to vector<4x512xf32>
    %75 = arith.mulf %73, %74 : vector<4x512xf32>
    %c5 = arith.constant 5 : index
    %c0_31 = arith.constant 0 : index
    %c0_32 = arith.constant 0 : index
    %76 = vector.load %arg2[%c5, %c0_31, %c0_32] : memref<9x8x4xf32, #tpu.memory_space<vmem>>, vector<1x8x4xf32>
    %77 = vector.shape_cast %76 : vector<1x8x4xf32> to vector<8x4xf32>
    %cst_33 = arith.constant dense<0.000000e+00> : vector<8x512xf32>
    %78 = tpu.matmul %77, %75, %cst_33 {dimension_numbers = #tpu.dot_dimension_numbers<[1], [0], [0], [1], [0, 0, 1, 1], [], []>} : vector<8x4xf32>, vector<4x512xf32>, vector<8x512xf32> -> vector<8x512xf32>
    %79 = arith.addf %70, %78 : vector<8x512xf32>
    %80 = vector.extract_strided_slice %29 {offsets = [0, 15], sizes = [4, 497], strides = [1, 1]} : vector<4x512xf32> to vector<4x497xf32>
    %81 = vector.extract_strided_slice %29 {offsets = [0, 0], sizes = [4, 15], strides = [1, 1]} : vector<4x512xf32> to vector<4x15xf32>
    %82 = tpu.concatenate %80, %81 in 1 : vector<4x497xf32>, vector<4x15xf32> -> vector<4x512xf32>
    %83 = arith.mulf %16, %21 : vector<1x512xf32>
    %84 = vector.broadcast %83 : vector<1x512xf32> to vector<4x512xf32>
    %85 = arith.mulf %82, %84 : vector<4x512xf32>
    %c6 = arith.constant 6 : index
    %c0_34 = arith.constant 0 : index
    %c0_35 = arith.constant 0 : index
    %86 = vector.load %arg2[%c6, %c0_34, %c0_35] : memref<9x8x4xf32, #tpu.memory_space<vmem>>, vector<1x8x4xf32>
    %87 = vector.shape_cast %86 : vector<1x8x4xf32> to vector<8x4xf32>
    %cst_36 = arith.constant dense<0.000000e+00> : vector<8x512xf32>
    %88 = tpu.matmul %87, %85, %cst_36 {dimension_numbers = #tpu.dot_dimension_numbers<[1], [0], [0], [1], [0, 0, 1, 1], [], []>} : vector<8x4xf32>, vector<4x512xf32>, vector<8x512xf32> -> vector<8x512xf32>
    %89 = arith.addf %79, %88 : vector<8x512xf32>
    %90 = vector.extract_strided_slice %29 {offsets = [0, 16], sizes = [4, 496], strides = [1, 1]} : vector<4x512xf32> to vector<4x496xf32>
    %91 = vector.extract_strided_slice %29 {offsets = [0, 0], sizes = [4, 16], strides = [1, 1]} : vector<4x512xf32> to vector<4x16xf32>
    %92 = tpu.concatenate %90, %91 in 1 : vector<4x496xf32>, vector<4x16xf32> -> vector<4x512xf32>
    %93 = vector.broadcast %16 : vector<1x512xf32> to vector<4x512xf32>
    %94 = arith.mulf %92, %93 : vector<4x512xf32>
    %c7 = arith.constant 7 : index
    %c0_37 = arith.constant 0 : index
    %c0_38 = arith.constant 0 : index
    %95 = vector.load %arg2[%c7, %c0_37, %c0_38] : memref<9x8x4xf32, #tpu.memory_space<vmem>>, vector<1x8x4xf32>
    %96 = vector.shape_cast %95 : vector<1x8x4xf32> to vector<8x4xf32>
    %cst_39 = arith.constant dense<0.000000e+00> : vector<8x512xf32>
    %97 = tpu.matmul %96, %94, %cst_39 {dimension_numbers = #tpu.dot_dimension_numbers<[1], [0], [0], [1], [0, 0, 1, 1], [], []>} : vector<8x4xf32>, vector<4x512xf32>, vector<8x512xf32> -> vector<8x512xf32>
    %98 = arith.addf %89, %97 : vector<8x512xf32>
    %99 = vector.extract_strided_slice %29 {offsets = [0, 17], sizes = [4, 495], strides = [1, 1]} : vector<4x512xf32> to vector<4x495xf32>
    %100 = vector.extract_strided_slice %29 {offsets = [0, 0], sizes = [4, 17], strides = [1, 1]} : vector<4x512xf32> to vector<4x17xf32>
    %101 = tpu.concatenate %99, %100 in 1 : vector<4x495xf32>, vector<4x17xf32> -> vector<4x512xf32>
    %102 = arith.mulf %16, %26 : vector<1x512xf32>
    %103 = vector.broadcast %102 : vector<1x512xf32> to vector<4x512xf32>
    %104 = arith.mulf %101, %103 : vector<4x512xf32>
    %c8 = arith.constant 8 : index
    %c0_40 = arith.constant 0 : index
    %c0_41 = arith.constant 0 : index
    %105 = vector.load %arg2[%c8, %c0_40, %c0_41] : memref<9x8x4xf32, #tpu.memory_space<vmem>>, vector<1x8x4xf32>
    %106 = vector.shape_cast %105 : vector<1x8x4xf32> to vector<8x4xf32>
    %cst_42 = arith.constant dense<0.000000e+00> : vector<8x512xf32>
    %107 = tpu.matmul %106, %104, %cst_42 {dimension_numbers = #tpu.dot_dimension_numbers<[1], [0], [0], [1], [0, 0, 1, 1], [], []>} : vector<8x4xf32>, vector<4x512xf32>, vector<8x512xf32> -> vector<8x512xf32>
    %108 = arith.addf %98, %107 : vector<8x512xf32>
    %109 = vector.broadcast %27 : vector<8x1xf32> to vector<8x512xf32>
    %110 = arith.addf %108, %109 : vector<8x512xf32>
    %cst_43 = arith.constant 0.000000e+00 : f32
    %111 = vector.broadcast %cst_43 : f32 to vector<8x512xf32>
    %112 = arith.maximumf %110, %111 : vector<8x512xf32>
    %113 = vector.extract_strided_slice %112 {offsets = [0, 495], sizes = [8, 17], strides = [1, 1]} : vector<8x512xf32> to vector<8x17xf32>
    %114 = vector.extract_strided_slice %112 {offsets = [0, 0], sizes = [8, 495], strides = [1, 1]} : vector<8x512xf32> to vector<8x495xf32>
    %115 = tpu.concatenate %113, %114 in 1 : vector<8x17xf32>, vector<8x495xf32> -> vector<8x512xf32>
    %116 = arith.mulf %11, %21 : vector<1x512xf32>
    %117 = vector.broadcast %116 : vector<1x512xf32> to vector<8x512xf32>
    %118 = arith.mulf %115, %117 : vector<8x512xf32>
    %c0_44 = arith.constant 0 : index
    %c0_45 = arith.constant 0 : index
    %c0_46 = arith.constant 0 : index
    %119 = vector.load %arg3[%c0_44, %c0_45, %c0_46] : memref<9x8x8xf32, #tpu.memory_space<vmem>>, vector<1x8x8xf32>
    %120 = vector.shape_cast %119 : vector<1x8x8xf32> to vector<8x8xf32>
    %cst_47 = arith.constant dense<0.000000e+00> : vector<8x512xf32>
    %121 = tpu.matmul %120, %118, %cst_47 {dimension_numbers = #tpu.dot_dimension_numbers<[1], [0], [0], [1], [0, 0, 1, 1], [], []>} : vector<8x8xf32>, vector<8x512xf32>, vector<8x512xf32> -> vector<8x512xf32>
    %122 = vector.extract_strided_slice %112 {offsets = [0, 496], sizes = [8, 16], strides = [1, 1]} : vector<8x512xf32> to vector<8x16xf32>
    %123 = vector.extract_strided_slice %112 {offsets = [0, 0], sizes = [8, 496], strides = [1, 1]} : vector<8x512xf32> to vector<8x496xf32>
    %124 = tpu.concatenate %122, %123 in 1 : vector<8x16xf32>, vector<8x496xf32> -> vector<8x512xf32>
    %125 = vector.broadcast %11 : vector<1x512xf32> to vector<8x512xf32>
    %126 = arith.mulf %124, %125 : vector<8x512xf32>
    %c1_48 = arith.constant 1 : index
    %c0_49 = arith.constant 0 : index
    %c0_50 = arith.constant 0 : index
    %127 = vector.load %arg3[%c1_48, %c0_49, %c0_50] : memref<9x8x8xf32, #tpu.memory_space<vmem>>, vector<1x8x8xf32>
    %128 = vector.shape_cast %127 : vector<1x8x8xf32> to vector<8x8xf32>
    %cst_51 = arith.constant dense<0.000000e+00> : vector<8x512xf32>
    %129 = tpu.matmul %128, %126, %cst_51 {dimension_numbers = #tpu.dot_dimension_numbers<[1], [0], [0], [1], [0, 0, 1, 1], [], []>} : vector<8x8xf32>, vector<8x512xf32>, vector<8x512xf32> -> vector<8x512xf32>
    %130 = arith.addf %121, %129 : vector<8x512xf32>
    %131 = vector.extract_strided_slice %112 {offsets = [0, 497], sizes = [8, 15], strides = [1, 1]} : vector<8x512xf32> to vector<8x15xf32>
    %132 = vector.extract_strided_slice %112 {offsets = [0, 0], sizes = [8, 497], strides = [1, 1]} : vector<8x512xf32> to vector<8x497xf32>
    %133 = tpu.concatenate %131, %132 in 1 : vector<8x15xf32>, vector<8x497xf32> -> vector<8x512xf32>
    %134 = arith.mulf %11, %26 : vector<1x512xf32>
    %135 = vector.broadcast %134 : vector<1x512xf32> to vector<8x512xf32>
    %136 = arith.mulf %133, %135 : vector<8x512xf32>
    %c2_52 = arith.constant 2 : index
    %c0_53 = arith.constant 0 : index
    %c0_54 = arith.constant 0 : index
    %137 = vector.load %arg3[%c2_52, %c0_53, %c0_54] : memref<9x8x8xf32, #tpu.memory_space<vmem>>, vector<1x8x8xf32>
    %138 = vector.shape_cast %137 : vector<1x8x8xf32> to vector<8x8xf32>
    %cst_55 = arith.constant dense<0.000000e+00> : vector<8x512xf32>
    %139 = tpu.matmul %138, %136, %cst_55 {dimension_numbers = #tpu.dot_dimension_numbers<[1], [0], [0], [1], [0, 0, 1, 1], [], []>} : vector<8x8xf32>, vector<8x512xf32>, vector<8x512xf32> -> vector<8x512xf32>
    %140 = arith.addf %130, %139 : vector<8x512xf32>
    %141 = vector.extract_strided_slice %112 {offsets = [0, 511], sizes = [8, 1], strides = [1, 1]} : vector<8x512xf32> to vector<8x1xf32>
    %142 = vector.extract_strided_slice %112 {offsets = [0, 0], sizes = [8, 511], strides = [1, 1]} : vector<8x512xf32> to vector<8x511xf32>
    %143 = tpu.concatenate %141, %142 in 1 : vector<8x1xf32>, vector<8x511xf32> -> vector<8x512xf32>
    %144 = vector.broadcast %21 : vector<1x512xf32> to vector<8x512xf32>
    %145 = arith.mulf %143, %144 : vector<8x512xf32>
    %c3_56 = arith.constant 3 : index
    %c0_57 = arith.constant 0 : index
    %c0_58 = arith.constant 0 : index
    %146 = vector.load %arg3[%c3_56, %c0_57, %c0_58] : memref<9x8x8xf32, #tpu.memory_space<vmem>>, vector<1x8x8xf32>
    %147 = vector.shape_cast %146 : vector<1x8x8xf32> to vector<8x8xf32>
    %cst_59 = arith.constant dense<0.000000e+00> : vector<8x512xf32>
    %148 = tpu.matmul %147, %145, %cst_59 {dimension_numbers = #tpu.dot_dimension_numbers<[1], [0], [0], [1], [0, 0, 1, 1], [], []>} : vector<8x8xf32>, vector<8x512xf32>, vector<8x512xf32> -> vector<8x512xf32>
    %149 = arith.addf %140, %148 : vector<8x512xf32>
    %c4_60 = arith.constant 4 : index
    %c0_61 = arith.constant 0 : index
    %c0_62 = arith.constant 0 : index
    %150 = vector.load %arg3[%c4_60, %c0_61, %c0_62] : memref<9x8x8xf32, #tpu.memory_space<vmem>>, vector<1x8x8xf32>
    %151 = vector.shape_cast %150 : vector<1x8x8xf32> to vector<8x8xf32>
    %cst_63 = arith.constant dense<0.000000e+00> : vector<8x512xf32>
    %152 = tpu.matmul %151, %112, %cst_63 {dimension_numbers = #tpu.dot_dimension_numbers<[1], [0], [0], [1], [0, 0, 1, 1], [], []>} : vector<8x8xf32>, vector<8x512xf32>, vector<8x512xf32> -> vector<8x512xf32>
    %153 = arith.addf %149, %152 : vector<8x512xf32>
    %154 = vector.extract_strided_slice %112 {offsets = [0, 1], sizes = [8, 511], strides = [1, 1]} : vector<8x512xf32> to vector<8x511xf32>
    %155 = vector.extract_strided_slice %112 {offsets = [0, 0], sizes = [8, 1], strides = [1, 1]} : vector<8x512xf32> to vector<8x1xf32>
    %156 = tpu.concatenate %154, %155 in 1 : vector<8x511xf32>, vector<8x1xf32> -> vector<8x512xf32>
    %157 = vector.broadcast %26 : vector<1x512xf32> to vector<8x512xf32>
    %158 = arith.mulf %156, %157 : vector<8x512xf32>
    %c5_64 = arith.constant 5 : index
    %c0_65 = arith.constant 0 : index
    %c0_66 = arith.constant 0 : index
    %159 = vector.load %arg3[%c5_64, %c0_65, %c0_66] : memref<9x8x8xf32, #tpu.memory_space<vmem>>, vector<1x8x8xf32>
    %160 = vector.shape_cast %159 : vector<1x8x8xf32> to vector<8x8xf32>
    %cst_67 = arith.constant dense<0.000000e+00> : vector<8x512xf32>
    %161 = tpu.matmul %160, %158, %cst_67 {dimension_numbers = #tpu.dot_dimension_numbers<[1], [0], [0], [1], [0, 0, 1, 1], [], []>} : vector<8x8xf32>, vector<8x512xf32>, vector<8x512xf32> -> vector<8x512xf32>
    %162 = arith.addf %153, %161 : vector<8x512xf32>
    %163 = vector.extract_strided_slice %112 {offsets = [0, 15], sizes = [8, 497], strides = [1, 1]} : vector<8x512xf32> to vector<8x497xf32>
    %164 = vector.extract_strided_slice %112 {offsets = [0, 0], sizes = [8, 15], strides = [1, 1]} : vector<8x512xf32> to vector<8x15xf32>
    %165 = tpu.concatenate %163, %164 in 1 : vector<8x497xf32>, vector<8x15xf32> -> vector<8x512xf32>
    %166 = arith.mulf %16, %21 : vector<1x512xf32>
    %167 = vector.broadcast %166 : vector<1x512xf32> to vector<8x512xf32>
    %168 = arith.mulf %165, %167 : vector<8x512xf32>
    %c6_68 = arith.constant 6 : index
    %c0_69 = arith.constant 0 : index
    %c0_70 = arith.constant 0 : index
    %169 = vector.load %arg3[%c6_68, %c0_69, %c0_70] : memref<9x8x8xf32, #tpu.memory_space<vmem>>, vector<1x8x8xf32>
    %170 = vector.shape_cast %169 : vector<1x8x8xf32> to vector<8x8xf32>
    %cst_71 = arith.constant dense<0.000000e+00> : vector<8x512xf32>
    %171 = tpu.matmul %170, %168, %cst_71 {dimension_numbers = #tpu.dot_dimension_numbers<[1], [0], [0], [1], [0, 0, 1, 1], [], []>} : vector<8x8xf32>, vector<8x512xf32>, vector<8x512xf32> -> vector<8x512xf32>
    %172 = arith.addf %162, %171 : vector<8x512xf32>
    %173 = vector.extract_strided_slice %112 {offsets = [0, 16], sizes = [8, 496], strides = [1, 1]} : vector<8x512xf32> to vector<8x496xf32>
    %174 = vector.extract_strided_slice %112 {offsets = [0, 0], sizes = [8, 16], strides = [1, 1]} : vector<8x512xf32> to vector<8x16xf32>
    %175 = tpu.concatenate %173, %174 in 1 : vector<8x496xf32>, vector<8x16xf32> -> vector<8x512xf32>
    %176 = vector.broadcast %16 : vector<1x512xf32> to vector<8x512xf32>
    %177 = arith.mulf %175, %176 : vector<8x512xf32>
    %c7_72 = arith.constant 7 : index
    %c0_73 = arith.constant 0 : index
    %c0_74 = arith.constant 0 : index
    %178 = vector.load %arg3[%c7_72, %c0_73, %c0_74] : memref<9x8x8xf32, #tpu.memory_space<vmem>>, vector<1x8x8xf32>
    %179 = vector.shape_cast %178 : vector<1x8x8xf32> to vector<8x8xf32>
    %cst_75 = arith.constant dense<0.000000e+00> : vector<8x512xf32>
    %180 = tpu.matmul %179, %177, %cst_75 {dimension_numbers = #tpu.dot_dimension_numbers<[1], [0], [0], [1], [0, 0, 1, 1], [], []>} : vector<8x8xf32>, vector<8x512xf32>, vector<8x512xf32> -> vector<8x512xf32>
    %181 = arith.addf %172, %180 : vector<8x512xf32>
    %182 = vector.extract_strided_slice %112 {offsets = [0, 17], sizes = [8, 495], strides = [1, 1]} : vector<8x512xf32> to vector<8x495xf32>
    %183 = vector.extract_strided_slice %112 {offsets = [0, 0], sizes = [8, 17], strides = [1, 1]} : vector<8x512xf32> to vector<8x17xf32>
    %184 = tpu.concatenate %182, %183 in 1 : vector<8x495xf32>, vector<8x17xf32> -> vector<8x512xf32>
    %185 = arith.mulf %16, %26 : vector<1x512xf32>
    %186 = vector.broadcast %185 : vector<1x512xf32> to vector<8x512xf32>
    %187 = arith.mulf %184, %186 : vector<8x512xf32>
    %c8_76 = arith.constant 8 : index
    %c0_77 = arith.constant 0 : index
    %c0_78 = arith.constant 0 : index
    %188 = vector.load %arg3[%c8_76, %c0_77, %c0_78] : memref<9x8x8xf32, #tpu.memory_space<vmem>>, vector<1x8x8xf32>
    %189 = vector.shape_cast %188 : vector<1x8x8xf32> to vector<8x8xf32>
    %cst_79 = arith.constant dense<0.000000e+00> : vector<8x512xf32>
    %190 = tpu.matmul %189, %187, %cst_79 {dimension_numbers = #tpu.dot_dimension_numbers<[1], [0], [0], [1], [0, 0, 1, 1], [], []>} : vector<8x8xf32>, vector<8x512xf32>, vector<8x512xf32> -> vector<8x512xf32>
    %191 = arith.addf %181, %190 : vector<8x512xf32>
    %192 = vector.broadcast %28 : vector<8x1xf32> to vector<8x512xf32>
    %193 = arith.addf %191, %192 : vector<8x512xf32>
    %cst_80 = arith.constant 0.000000e+00 : f32
    %194 = vector.broadcast %cst_80 : f32 to vector<8x512xf32>
    %195 = arith.maximumf %193, %194 : vector<8x512xf32>
    %196 = vector.extract_strided_slice %195 {offsets = [0, 1], sizes = [8, 511], strides = [1, 1]} : vector<8x512xf32> to vector<8x511xf32>
    %197 = vector.extract_strided_slice %195 {offsets = [0, 0], sizes = [8, 1], strides = [1, 1]} : vector<8x512xf32> to vector<8x1xf32>
    %198 = tpu.concatenate %196, %197 in 1 : vector<8x511xf32>, vector<8x1xf32> -> vector<8x512xf32>
    %199 = vector.extract_strided_slice %195 {offsets = [0, 16], sizes = [8, 496], strides = [1, 1]} : vector<8x512xf32> to vector<8x496xf32>
    %200 = vector.extract_strided_slice %195 {offsets = [0, 0], sizes = [8, 16], strides = [1, 1]} : vector<8x512xf32> to vector<8x16xf32>
    %201 = tpu.concatenate %199, %200 in 1 : vector<8x496xf32>, vector<8x16xf32> -> vector<8x512xf32>
    %202 = vector.extract_strided_slice %195 {offsets = [0, 17], sizes = [8, 495], strides = [1, 1]} : vector<8x512xf32> to vector<8x495xf32>
    %203 = vector.extract_strided_slice %195 {offsets = [0, 0], sizes = [8, 17], strides = [1, 1]} : vector<8x512xf32> to vector<8x17xf32>
    %204 = tpu.concatenate %202, %203 in 1 : vector<8x495xf32>, vector<8x17xf32> -> vector<8x512xf32>
    %c0_i32 = arith.constant 0 : i32
    %205 = vector.broadcast %c0_i32 : i32 to vector<8x512xi32>
    %206 = arith.cmpf ogt, %198, %195 : vector<8x512xf32>
    %c1_i32_81 = arith.constant 1 : i32
    %207 = vector.broadcast %c1_i32_81 : i32 to vector<8x512xi32>
    %208 = arith.select %206, %207, %205 : vector<8x512xi1>, vector<8x512xi32>
    %209 = arith.select %206, %198, %195 : vector<8x512xi1>, vector<8x512xf32>
    %210 = arith.cmpf ogt, %201, %209 : vector<8x512xf32>
    %c16_i32 = arith.constant 16 : i32
    %211 = vector.broadcast %c16_i32 : i32 to vector<8x512xi32>
    %212 = arith.select %210, %211, %208 : vector<8x512xi1>, vector<8x512xi32>
    %213 = arith.select %210, %201, %209 : vector<8x512xi1>, vector<8x512xf32>
    %214 = arith.cmpf ogt, %204, %213 : vector<8x512xf32>
    %c17_i32 = arith.constant 17 : i32
    %215 = vector.broadcast %c17_i32 : i32 to vector<8x512xi32>
    %216 = arith.select %214, %215, %212 : vector<8x512xi1>, vector<8x512xi32>
    %217 = arith.select %214, %204, %213 : vector<8x512xi1>, vector<8x512xf32>
    %c255_i32 = arith.constant 255 : i32
    %218 = vector.broadcast %c255_i32 : i32 to vector<1x512xi32>
    %219 = arith.andi %0, %218 : vector<1x512xi32>
    %c0_82 = arith.constant 0 : index
    %c0_83 = arith.constant 0 : index
    %220 = vector.load %arg5[%c0_82, %c0_83] : memref<8x512xf32, #tpu.memory_space<vmem>>, vector<8x512xf32>
    tpu.vector_store %arg5[%c0_82, %c0_83], %217 {strides = array<i32>} : memref<8x512xf32, #tpu.memory_space<vmem>>, vector<8x512xf32>,
    %221 = vector.broadcast %219 : vector<1x512xi32> to vector<8x512xi32>
    %222 = arith.addi %221, %216 : vector<8x512xi32>
    %c0_84 = arith.constant 0 : index
    %c0_85 = arith.constant 0 : index
    %223 = vector.load %arg6[%c0_84, %c0_85] : memref<8x512xi32, #tpu.memory_space<vmem>>, vector<8x512xi32>
    tpu.vector_store %arg6[%c0_84, %c0_85], %222 {strides = array<i32>} : memref<8x512xi32, #tpu.memory_space<vmem>>, vector<8x512xi32>,
    return
  }
  func.func @transform_0(%arg0: i32) -> (i32, i32) {
    %c0_i32 = arith.constant 0 : i32
    %c0_i32_0 = arith.constant 0 : i32
    %c0_i32_1 = arith.constant 0 : i32
    return %c0_i32, %c0_i32_0 : i32, i32
  }
  func.func @transform_1(%arg0: i32) -> (i32, i32, i32) {
    %c0_i32 = arith.constant 0 : i32
    %c0_i32_0 = arith.constant 0 : i32
    %c0_i32_1 = arith.constant 0 : i32
    %c0_i32_2 = arith.constant 0 : i32
    return %c0_i32, %c0_i32_0, %c0_i32_1 : i32, i32, i32
  }
  func.func @transform_2(%arg0: i32) -> (i32, i32, i32) {
    %c0_i32 = arith.constant 0 : i32
    %c0_i32_0 = arith.constant 0 : i32
    %c0_i32_1 = arith.constant 0 : i32
    %c0_i32_2 = arith.constant 0 : i32
    return %c0_i32, %c0_i32_0, %c0_i32_1 : i32, i32, i32
  }
  func.func @transform_3(%arg0: i32) -> (i32, i32) {
    %c0_i32 = arith.constant 0 : i32
    %c0_i32_0 = arith.constant 0 : i32
    %c0_i32_1 = arith.constant 0 : i32
    return %c0_i32, %c0_i32_0 : i32, i32
  }
  func.func @transform_4(%arg0: i32) -> (i32, i32) {
    %c0_i32 = arith.constant 0 : i32
    %c0_i32_0 = arith.constant 0 : i32
    %c0_i32_1 = arith.constant 0 : i32
    return %c0_i32, %c0_i32_0 : i32, i32
  }
  func.func @transform_5(%arg0: i32) -> (i32, i32) {
    %c0_i32 = arith.constant 0 : i32
    %c0_i32_0 = arith.constant 0 : i32
    %c0_i32_1 = arith.constant 0 : i32
    return %c0_i32, %c0_i32_0 : i32, i32
  }
}

</mosaic_0001>

<bundles_post_ra>
// kernel: tpu_custom_call.1
= control target key start
LH: loop header
LB: loop body
LE: loop exit
PB: predicated region body
PF: predicated region fallthrough
CT: control target
= control target key end

     0   :  { %11 = vsyncpa [#allocation3], 0  ;;  %v4306_v4 = vmov 0.0   ;;  %s4298_s0 = inlined_call_operand.vmem [shape: f32[4,512], index: 0, kind: input, shape index: {}]   ;;  %s4299_s1 = inlined_call_operand.vmem [shape: f32[9,8,4], index: 1, kind: input, shape index: {}]   ;;  %s4300_s2 = inlined_call_operand.vmem [shape: f32[9,8,8], index: 2, kind: input, shape index: {}]   ;;  %s4301_s3 = inlined_call_operand.vmem [shape: f32[8,2], index: 3, kind: input, shape index: {}]   ;;  %s4302_s4 = inlined_call_operand.hbm [shape: f32[8,512], index: 4, kind: output, shape index: {0}]   ;;  %s4303_s5 = inlined_call_operand.hbm [shape: s32[8,512], index: 5, kind: output, shape index: {1}]  }
   0x1   :  { %v3603_v0 = vld [vmem:[%s4298_s0 + $0x8] sm:$0xff]  ;;  %v3608_v1 = vld [vmem:[%s4298_s0] sm:$0xff]  ;;  %209 = vmatprep.mubr.f32.mxu0 %v4306_v4  ;;  %280 = vmatprep.mubr.f32.mxu1 %v4306_v4 }
   0x2   :  { %v3612_v2 = vcombine.high %v3603_v0, %v3603_v0  ;;  %v3616_v3 = vcombine.high %v3608_v1, %v3608_v1 }
   0x3   :  { %12 = vsyncpa [#allocation5], 0  ;;  %s3558_s22 = smov 16   ;;  %s3559_s0 = smov 17   ;;  %v4304_v5 = vmov 0   ;;  %v3688_v6 = vld [vmem:[%s4301_s3] sm:$0xff]  ;;  %v21_v7 = vlaneseq }
   0x4   :  { %104 = vrot.lane.b32.xlu0 %v3612_v2, %s3558_s22  ;;  %109 = vrot.lane.b32.xlu1 %v3616_v3, %s3558_s22  ;;  %s3560_s23 = smov 15   ;;  %s3561_s24 = smov 1   ;;  %vm113_vm4 = vcmask 130048   ;;  %vm132_vm5 = vcmask 1043456   ;;  %v3408_v44 = vld [vmem:[%s4299_s1 + $0x8] sm:$0xff]  ;;  %vm128_vm10 = vcmask 31744  }
   0x5   :  { %s3562_s25 = smov 127   ;;  %s3563_s26 = smov 113   ;;  %3509 = vset.pattern.permute.xlu0 %v4304_v5  ;;  %v3691_v8 = vand.u32 127, %v21_v7  ;;  %vm86_vm11 = vcmask 138240  }
   0x6   :  { %s3564_s27 = smov 112   ;;  %s3566_s28 = smov 111  }
   0x7   :  { %4321 = vst [vmem:[#allocation8_spill] sm:$0xff] %v3691_v8  ;;  %v3694_v9 = vadd.s32 256, %v3691_v8  ;;  %v3697_v10 = vadd.s32 128, %v3691_v8  ;;  %v3700_v11 = vadd.s32 384, %v3691_v8  ;;  %v30_v12 = vshra.s32 %v3691_v8, 4 }
   0x8   :  { %107 = vrot.lane.b32.xlu0 %v3608_v1, %s3558_s22  ;;  %111 = vrot.lane.b32.xlu1 %v3603_v0, %s3558_s22  ;;  %v26_v20 = vand.u32 15, %v3691_v8 }
   0x9   :  { %4322 = vst [vmem:[#allocation9_spill] sm:$0xff] %v3694_v9  ;;  %4323 = vst [vmem:[#allocation10_spill] sm:$0xff] %v3697_v10  ;;  %v32_v13 = vshra.s32 %v3694_v9, 4  ;;  %v31_v14 = vshra.s32 %v3697_v10, 4  ;;  %v33_v15 = vshra.s32 %v3700_v11, 4  ;;  %v3706_v16 = vand.u32 15, %v30_v12 }
   0xa   :  { %4324 = vst [vmem:[#allocation11_spill] sm:$0xff] %v3700_v11  ;;  %v27_v21 = vand.u32 15, %v3697_v10  ;;  %v28_v22 = vand.u32 15, %v3694_v9  ;;  %v29_v25 = vand.u32 15, %v3700_v11  ;;  %vm3734_vm6 = vcmp.ge.s32.totalorder %v26_v20, 1  ;;  %v103_v12 = vld [vmem:[%s4299_s1] sm:$0xff] }
   0xb   :  { %v3708_v17 = vand.u32 15, %v32_v13  ;;  %v3710_v18 = vand.u32 15, %v31_v14  ;;  %v3712_v19 = vand.u32 15, %v33_v15  ;;  %vm38_vm0 = vcmp.ge.s32.totalorder %v3706_v16, 1 }
   0xc   :  { %75 = vrot.lane.b32.xlu0 %v3612_v2, %s3559_s0  ;;  %80 = vrot.lane.b32.xlu1 %v3608_v1, %s3559_s0  ;;  %v3723_v26 = vsel %vm38_vm0, 1.0, %v4306_v4  ;;  %vm55_vm7 = vcmp.ge.s32.totalorder %v27_v21, 1  ;;  %vm56_vm8 = vcmp.ge.s32.totalorder %v28_v22, 1  ;;  %vm57_vm9 = vcmp.ge.s32.totalorder %v29_v25, 1 }
   0xd   :  { %vm40_vm1 = vcmp.ge.s32.totalorder %v3708_v17, 1  ;;  %vm39_vm2 = vcmp.ge.s32.totalorder %v3710_v18, 1  ;;  %vm41_vm3 = vcmp.ge.s32.totalorder %v3712_v19, 1  ;;  %v3747_v41 = vsel %vm55_vm7, 1.0, %v4306_v4 }
   0xe   :  { %v3726_v27 = vsel %vm40_vm1, 1.0, %v4306_v4  ;;  %v3729_v28 = vsel %vm39_vm2, 1.0, %v4306_v4  ;;  %v3732_v29 = vsel %vm41_vm3, 1.0, %v4306_v4  ;;  %v3750_v42 = vsel %vm56_vm8, 1.0, %v4306_v4 }
   0xf   :  { %v3753_v43 = vsel %vm57_vm9, 1.0, %v4306_v4  ;;  %v3761_v47 = vsel %vm3734_vm6, 1.0, %v4306_v4  ;;  %v3769_v48 = vmul.f32 %v3747_v41, %v3729_v28  ;;  %v3773_v49 = vmul.f32 %v3750_v42, %v3726_v27 }
  0x10   :  { %82 = vrot.lane.b32.xlu0 %v3616_v3, %s3559_s0  ;;  %84 = vrot.lane.b32.xlu1 %v3603_v0, %s3559_s0  ;;  %v3777_v50 = vmul.f32 %v3753_v43, %v3732_v29  ;;  %v3783_v51 = vmul.f32 %v3761_v47, %v3723_v26  ;;  %vm63_vm12 = vcmp.le.s32.totalorder %v27_v21, 14  ;;  %vm64_vm13 = vcmp.le.s32.totalorder %v28_v22, 14 }
  0x11   :  { %vm65_vm14 = vcmp.le.s32.totalorder %v29_v25, 14  ;;  %vm62_vm15 = vcmp.le.s32.totalorder %v26_v20, 14  ;;  %v3796_v62 = vsel %vm63_vm12, 1.0, %v4306_v4  ;;  %v3799_v63 = vsel %vm64_vm13, 1.0, %v4306_v4 }
  0x12   :  { %v3802_v7 = vsel %vm65_vm14, 1.0, %v4306_v4  ;;  %v3808_v15 = vsel %vm62_vm15, 1.0, %v4306_v4  ;;  %vm453_vm0 = vcmask 121856   ;;  %v3816_v20 = vmul.f32 %v3796_v62, %v3729_v28 }
  0x13   :  { %v3820_v21 = vmul.f32 %v3799_v63, %v3726_v27  ;;  %v3824_v22 = vmul.f32 %v3802_v7, %v3732_v29  ;;  %vm642_vm1 = vcmask 7168   ;;  %vm985_vm2 = vcmask 1039360  }
  0x14   :  { %444 = vrot.lane.b32.xlu0 %v3612_v2, %s3560_s23  ;;  %447 = vrot.lane.b32.xlu1 %v3608_v1, %s3560_s23  ;;  %vm47_vm3 = vcmp.le.s32.totalorder %v3710_v18, 14  ;;  %vm48_vm6 = vcmp.le.s32.totalorder %v3708_v17, 14  ;;  %vm49_vm7 = vcmp.le.s32.totalorder %v3712_v19, 14  ;;  %vm46_vm8 = vcmp.le.s32.totalorder %v3706_v16, 14 }
  0x15   :  { %v3905_v16 = vsel %vm47_vm3, 1.0, %v4306_v4  ;;  %vm1170_vm9 = vcmask 924672   ;;  %vm1359_vm12 = vcmask 916480   ;;  %vm1544_vm13 = vcmask 908288  }
  0x16   :  { %4327 = vst [vmem:[#allocation12_spill] sm:$0xff] %v3905_v16  ;;  %v3927_v17 = vmul.f32 %v3747_v41, %v3905_v16 }
  0x18   :  { %449 = vrot.lane.b32.xlu0 %v3616_v3, %s3560_s23  ;;  %451 = vrot.lane.b32.xlu1 %v3603_v0, %s3560_s23 }
  0x1c   :  { %633 = vrot.lane.b32.xlu0 %v3612_v2, %s3561_s24  ;;  %636 = vrot.lane.b32.xlu1 %v3608_v1, %s3561_s24 }
  0x20   :  { %638 = vrot.lane.b32.xlu0 %v3616_v3, %s3561_s24  ;;  %640 = vrot.lane.b32.xlu1 %v3603_v0, %s3561_s24 }
  0x24   :  { %977 = vrot.lane.b32.xlu0 %v3608_v1, %s3562_s25  ;;  %979 = vrot.lane.b32.xlu1 %v3616_v3, %s3562_s25 }
  0x28   :  { %981 = vrot.lane.b32.xlu0 %v3603_v0, %s3562_s25  ;;  %983 = vrot.lane.b32.xlu1 %v3612_v2, %s3562_s25 }
  0x2c   :  { %1162 = vrot.lane.b32.xlu0 %v3608_v1, %s3563_s26  ;;  %1164 = vrot.lane.b32.xlu1 %v3616_v3, %s3563_s26 }
  0x30   :  { %1166 = vrot.lane.b32.xlu0 %v3603_v0, %s3563_s26  ;;  %1168 = vrot.lane.b32.xlu1 %v3612_v2, %s3563_s26 }
  0x34   :  { %1351 = vrot.lane.b32.xlu0 %v3608_v1, %s3564_s27  ;;  %1353 = vrot.lane.b32.xlu1 %v3616_v3, %s3564_s27 }
  0x38   :  { %1355 = vrot.lane.b32.xlu0 %v3603_v0, %s3564_s27  ;;  %1357 = vrot.lane.b32.xlu1 %v3612_v2, %s3564_s27 }
  0x3c   :  { %1536 = vrot.lane.b32.xlu0 %v3608_v1, %s3566_s28  ;;  %1538 = vrot.lane.b32.xlu1 %v3616_v3, %s3566_s28 }
  0x40   :  { %1540 = vrot.lane.b32.xlu0 %v3603_v0, %s3566_s28  ;;  %1542 = vrot.lane.b32.xlu1 %v3612_v2, %s3566_s28 }
  0x44   :  { %1727 = vperm.xlu0 %3509, %v3688_v6  }
  0x76   :  { %v105_v23 = vpop.permute.xlu0 %104  ;;  %v110_v24 = vpop.permute.xlu1 %109 }
  0x7a   :  { %v108_v30 = vpop.permute.xlu0 %107  ;;  %v112_v31 = vpop.permute.xlu1 %111 }
  0x7b   :  { %v114_v33 = vsel %vm113_vm4, %v108_v30, %v110_v24  ;;  %v121_v34 = vsel %vm113_vm4, %v105_v23, %v108_v30  ;;  %v115_v35 = vsel %vm113_vm4, %v110_v24, %v112_v31  ;;  %v116_v36 = vsel %vm113_vm4, %v112_v31, %v105_v23 }
  0x7c   :  { %v122_v37 = vmul.f32 %v121_v34, %v3723_v26  ;;  %v124_v38 = vmul.f32 %v115_v35, %v3726_v27  ;;  %v123_v39 = vmul.f32 %v114_v33, %v3729_v28  ;;  %v125_v40 = vmul.f32 %v116_v36, %v3732_v29 }
  0x7d   :  { %v3830_v23 = vmul.f32 %v3808_v15, %v3723_v26 }
  0x7e   :  { %v76_v45 = vpop.permute.xlu0 %75  ;;  %v81_v46 = vpop.permute.xlu1 %80  ;;  %3409 = vmatprep.subr.msk.mxu0 %vm132_vm5, %v123_v39  ;;  %3412 = vmatprep.subr.msk.mxu1 %vm132_vm5, %v125_v40 }
  0x7f   :  { %3410 = vmatpush1.msk.msra.mxu0 %vm132_vm5, %v122_v37  ;;  %3413 = vmatpush1.msk.msra.mxu1 %vm132_vm5, %v124_v38  ;;  %v94_v52 = vsel %vm86_vm11, %v76_v45, %v81_v46  ;;  %v3421_v38 = vld [vmem:[%s4299_s1 + $0x10] sm:$0xff] }
  0x80   :  { %3411 = vmatmul.mubr.msk.f32.vlgmr.msra.gmra.mxu0 %vm128_vm10, %v3408_v44  ;;  %3414 = vmatmul.mubr.msk.f32.vlgmr.msra.gmra.mxu1 %vm128_vm10, %v3408_v44  ;;  %v99_v61 = vmul.f32 %v3783_v51, %v94_v52 }
  0x81   :  { %366 = vmatprep.mubr.f32.mxu0 %v4306_v4  ;;  %437 = vmatprep.mubr.f32.mxu1 %v4306_v4 }
  0x82   :  { %v83_v53 = vpop.permute.xlu0 %82  ;;  %v85_v54 = vpop.permute.xlu1 %84 }
  0x83   :  { %v87_v55 = vsel %vm86_vm11, %v81_v46, %v83_v53  ;;  %v88_v56 = vsel %vm86_vm11, %v83_v53, %v85_v54  ;;  %v89_v57 = vsel %vm86_vm11, %v85_v54, %v76_v45 }
  0x84   :  { %v100_v58 = vmul.f32 %v3769_v48, %v87_v55  ;;  %v101_v59 = vmul.f32 %v3773_v49, %v88_v56  ;;  %v102_v60 = vmul.f32 %v3777_v50, %v89_v57 }
  0x86   :  { %v445_v13 = vpop.permute.xlu0 %444  ;;  %v448_v14 = vpop.permute.xlu1 %447  ;;  %3415 = vmatprep.subr.msk.mxu0 %vm132_vm5, %v100_v58  ;;  %3418 = vmatprep.subr.msk.mxu1 %vm132_vm5, %v102_v60 }
  0x87   :  { %3416 = vmatpush1.msk.msra.mxu0 %vm132_vm5, %v99_v61  ;;  %3419 = vmatpush1.msk.msra.mxu1 %vm132_vm5, %v101_v59  ;;  %v461_v24 = vsel %vm453_vm0, %v445_v13, %v448_v14  ;;  %v3428_v59 = vld [vmem:[%s4299_s1 + $0x18] sm:$0xff] }
  0x88   :  { %3417 = vmatmul.mubr.msk.f32.vlgmr.msra.gmra.mxu0 %vm128_vm10, %v103_v12  ;;  %3420 = vmatmul.mubr.msk.f32.vlgmr.msra.gmra.mxu1 %vm128_vm10, %v103_v12  ;;  %v466_v37 = vmul.f32 %v3830_v23, %v461_v24  ;;  %v3435_v12 = vld [vmem:[%s4299_s1 + $0x20] sm:$0xff] }
  0x89   :  { %551 = vmatprep.mubr.f32.mxu0 %v4306_v4  ;;  %622 = vmatprep.mubr.f32.mxu1 %v4306_v4 }
  0x8a   :  { %v450_v25 = vpop.permute.xlu0 %449  ;;  %v452_v30 = vpop.permute.xlu1 %451 }
  0x8b   :  { %v454_v31 = vsel %vm453_vm0, %v448_v14, %v450_v25  ;;  %v455_v32 = vsel %vm453_vm0, %v450_v25, %v452_v30  ;;  %v456_v33 = vsel %vm453_vm0, %v452_v30, %v445_v13 }
  0x8c   :  { %v467_v34 = vmul.f32 %v3816_v20, %v454_v31  ;;  %v468_v35 = vmul.f32 %v3820_v21, %v455_v32  ;;  %v469_v36 = vmul.f32 %v3824_v22, %v456_v33  ;;  %v3910_v33 = vsel %vm48_vm6, 1.0, %v4306_v4 }
  0x8d   :  { %4328 = vst [vmem:[#allocation13_spill] sm:$0xff] %v3910_v33  ;;  %v3931_v18 = vmul.f32 %v3750_v42, %v3910_v33 }
  0x8e   :  { %v634_v39 = vpop.permute.xlu0 %633  ;;  %v637_v40 = vpop.permute.xlu1 %636  ;;  %3422 = vmatprep.subr.msk.mxu0 %vm132_vm5, %v467_v34  ;;  %3425 = vmatprep.subr.msk.mxu1 %vm132_vm5, %v469_v36  ;;  %v3915_v34 = vsel %vm49_vm7, 1.0, %v4306_v4 }
  0x8f   :  { %3423 = vmatpush1.msk.msra.mxu0 %vm132_vm5, %v466_v37  ;;  %3426 = vmatpush1.msk.msra.mxu1 %vm132_vm5, %v468_v35  ;;  %v650_v44 = vsel %vm642_vm1, %v634_v39, %v637_v40  ;;  %4329 = vst [vmem:[#allocation14_spill] sm:$0xff] %v3915_v34  ;;  %v3918_v37 = vsel %vm46_vm8, 1.0, %v4306_v4  ;;  %4331 = vst [vmem:[#allocation16_spill] sm:$0xff] %v3931_v18  ;;  %v3935_v19 = vmul.f32 %v3753_v43, %v3915_v34 }
  0x90   :  { %3424 = vmatmul.mubr.msk.f32.vlgmr.msra.gmra.mxu0 %vm128_vm10, %v3421_v38  ;;  %3427 = vmatmul.mubr.msk.f32.vlgmr.msra.gmra.mxu1 %vm128_vm10, %v3421_v38  ;;  %v651_v58 = vmul.f32 %v650_v44, %v3761_v47  ;;  %4330 = vst [vmem:[#allocation15_spill] sm:$0xff] %v3918_v37  ;;  %v3940_v38 = vmul.f32 %v3761_v47, %v3918_v37 }
  0x91   :  { %736 = vmatprep.mubr.f32.mxu0 %v4306_v4  ;;  %807 = vmatprep.mubr.f32.mxu1 %v4306_v4 }
  0x92   :  { %v639_v45 = vpop.permute.xlu0 %638  ;;  %v641_v46 = vpop.permute.xlu1 %640 }
  0x93   :  { %v643_v52 = vsel %vm642_vm1, %v637_v40, %v639_v45  ;;  %v644_v53 = vsel %vm642_vm1, %v639_v45, %v641_v46  ;;  %v645_v54 = vsel %vm642_vm1, %v641_v46, %v634_v39 }
  0x94   :  { %v652_v55 = vmul.f32 %v643_v52, %v3747_v41  ;;  %v653_v56 = vmul.f32 %v644_v53, %v3750_v42  ;;  %v654_v57 = vmul.f32 %v645_v54, %v3753_v43 }
  0x96   :  { %v978_v60 = vpop.permute.xlu0 %977  ;;  %v980_v61 = vpop.permute.xlu1 %979  ;;  %3429 = vmatprep.subr.msk.mxu0 %vm132_vm5, %v652_v55  ;;  %3432 = vmatprep.subr.msk.mxu1 %vm132_vm5, %v654_v57  ;;  %v3449_v57 = vld [vmem:[%s4299_s1 + $0x30] sm:$0xff] }
  0x97   :  { %3430 = vmatpush1.msk.msra.mxu0 %vm132_vm5, %v651_v58  ;;  %3433 = vmatpush1.msk.msra.mxu1 %vm132_vm5, %v653_v56  ;;  %v986_v13 = vsel %vm985_vm2, %v978_v60, %v980_v61 }
  0x98   :  { %3431 = vmatmul.mubr.msk.f32.vlgmr.msra.gmra.mxu0 %vm128_vm10, %v3428_v59  ;;  %3434 = vmatmul.mubr.msk.f32.vlgmr.msra.gmra.mxu1 %vm128_vm10, %v3428_v59  ;;  %v995_v32 = vmul.f32 %v986_v13, %v3808_v15 }
  0x99   :  { %3436 = vmatprep.subr.msk.mxu0 %vm132_vm5, %v3616_v3  ;;  %895 = vmatprep.mubr.f32.mxu0 %v4306_v4 }
  0x9a   :  { %v982_v14 = vpop.permute.xlu0 %981  ;;  %v984_v24 = vpop.permute.xlu1 %983  ;;  %3437 = vmatpush1.msk.msra.mxu0 %vm132_vm5, %v3608_v1  ;;  %3439 = vmatprep.subr.msk.mxu1 %vm132_vm5, %v3612_v2 }
  0x9b   :  { %v987_v3 = vsel %vm985_vm2, %v980_v61, %v982_v14  ;;  %v988_v25 = vsel %vm985_vm2, %v982_v14, %v984_v24  ;;  %v994_v30 = vsel %vm985_vm2, %v984_v24, %v978_v60  ;;  %3440 = vmatpush1.msk.msra.mxu1 %vm132_vm5, %v3603_v0  ;;  %966 = vmatprep.mubr.f32.mxu1 %v4306_v4  ;;  %v3442_v0 = vld [vmem:[%s4299_s1 + $0x28] sm:$0xff] }
  0x9c   :  { %v996_v1 = vmul.f32 %v987_v3, %v3796_v62  ;;  %v997_v2 = vmul.f32 %v988_v25, %v3799_v63  ;;  %v998_v31 = vmul.f32 %v994_v30, %v3802_v7  ;;  %3438 = vmatmul.mubr.msk.f32.vlgmr.msra.gmra.mxu0 %vm128_vm10, %v3435_v12  ;;  %3441 = vmatmul.mubr.msk.f32.vlgmr.msra.gmra.mxu1 %vm128_vm10, %v3435_v12 }
  0x9d   :  { %1080 = vmatprep.mubr.f32.mxu0 %v4306_v4  ;;  %1151 = vmatprep.mubr.f32.mxu1 %v4306_v4 }
  0x9e   :  { %v1163_v35 = vpop.permute.xlu0 %1162  ;;  %v1165_v36 = vpop.permute.xlu1 %1164  ;;  %3443 = vmatprep.subr.msk.mxu0 %vm132_vm5, %v996_v1  ;;  %3446 = vmatprep.subr.msk.mxu1 %vm132_vm5, %v998_v31 }
  0x9f   :  { %3444 = vmatpush1.msk.msra.mxu0 %vm132_vm5, %v995_v32  ;;  %3447 = vmatpush1.msk.msra.mxu1 %vm132_vm5, %v997_v2  ;;  %v1171_v39 = vsel %vm1170_vm9, %v1163_v35, %v1165_v36  ;;  %v3456_v2 = vld [vmem:[%s4299_s1 + $0x38] sm:$0xff] }
  0xa0   :  { %3445 = vmatmul.mubr.msk.f32.vlgmr.msra.gmra.mxu0 %vm128_vm10, %v3442_v0  ;;  %3448 = vmatmul.mubr.msk.f32.vlgmr.msra.gmra.mxu1 %vm128_vm10, %v3442_v0  ;;  %v1184_v56 = vmul.f32 %v3940_v38, %v1171_v39  ;;  %v3982_v0 = vmul.f32 %v3796_v62, %v3905_v16  ;;  %v3994_v39 = vmul.f32 %v3808_v15, %v3918_v37 }
  0xa1   :  { %1269 = vmatprep.mubr.f32.mxu0 %v4306_v4  ;;  %1340 = vmatprep.mubr.f32.mxu1 %v4306_v4 }
  0xa2   :  { %v1167_v40 = vpop.permute.xlu0 %1166  ;;  %v1169_v44 = vpop.permute.xlu1 %1168  ;;  %4332 = vst [vmem:[#allocation17_spill] sm:$0xff] %v3982_v0  ;;  %4335 = vst [vmem:[#allocation20_spill] sm:$0xff] %v3994_v39 }
  0xa3   :  { %v1172_v45 = vsel %vm1170_vm9, %v1165_v36, %v1167_v40  ;;  %v1173_v46 = vsel %vm1170_vm9, %v1167_v40, %v1169_v44  ;;  %v1179_v52 = vsel %vm1170_vm9, %v1169_v44, %v1163_v35  ;;  %v3986_v35 = vmul.f32 %v3799_v63, %v3910_v33 }
  0xa4   :  { %v1185_v53 = vmul.f32 %v3927_v17, %v1172_v45  ;;  %v1186_v54 = vmul.f32 %v3931_v18, %v1173_v46  ;;  %v1187_v55 = vmul.f32 %v3935_v19, %v1179_v52  ;;  %v3990_v36 = vmul.f32 %v3802_v7, %v3915_v34 }
  0xa5   :  { %4333 = vst [vmem:[#allocation18_spill] sm:$0xff] %v3986_v35 }
  0xa6   :  { %v1352_v58 = vpop.permute.xlu0 %1351  ;;  %v1354_v59 = vpop.permute.xlu1 %1353  ;;  %3450 = vmatprep.subr.msk.mxu0 %vm132_vm5, %v1185_v53  ;;  %3453 = vmatprep.subr.msk.mxu1 %vm132_vm5, %v1187_v55  ;;  %4334 = vst [vmem:[#allocation19_spill] sm:$0xff] %v3990_v36 }
  0xa7   :  { %3451 = vmatpush1.msk.msra.mxu0 %vm132_vm5, %v1184_v56  ;;  %3454 = vmatpush1.msk.msra.mxu1 %vm132_vm5, %v1186_v54  ;;  %v1360_v60 = vsel %vm1359_vm12, %v1352_v58, %v1354_v59 }
  0xa8   :  { %3452 = vmatmul.mubr.msk.f32.vlgmr.msra.gmra.mxu0 %vm128_vm10, %v3449_v57  ;;  %3455 = vmatmul.mubr.msk.f32.vlgmr.msra.gmra.mxu1 %vm128_vm10, %v3449_v57  ;;  %v1369_v1 = vmul.f32 %v1360_v60, %v3918_v37 }
  0xa9   :  { %1454 = vmatprep.mubr.f32.mxu0 %v4306_v4  ;;  %1525 = vmatprep.mubr.f32.mxu1 %v4306_v4 }
  0xaa   :  { %v1356_v61 = vpop.permute.xlu0 %1355  ;;  %v1358_v12 = vpop.permute.xlu1 %1357 }
  0xab   :  { %v1361_v13 = vsel %vm1359_vm12, %v1354_v59, %v1356_v61  ;;  %v1362_v14 = vsel %vm1359_vm12, %v1356_v61, %v1358_v12  ;;  %v1368_v24 = vsel %vm1359_vm12, %v1358_v12, %v1352_v58  ;;  %v3463_v58 = vld [vmem:[%s4299_s1 + $0x40] sm:$0xff] }
  0xac   :  { %v1370_v3 = vmul.f32 %v1361_v13, %v3905_v16  ;;  %v1371_v25 = vmul.f32 %v1362_v14, %v3910_v33  ;;  %v1372_v30 = vmul.f32 %v1368_v24, %v3915_v34 }
  0xae   :  { %v1537_v31 = vpop.permute.xlu0 %1536  ;;  %v1539_v32 = vpop.permute.xlu1 %1538  ;;  %3457 = vmatprep.subr.msk.mxu0 %vm132_vm5, %v1370_v3  ;;  %3460 = vmatprep.subr.msk.mxu1 %vm132_vm5, %v1372_v30 }
  0xaf   :  { %3458 = vmatpush1.msk.msra.mxu0 %vm132_vm5, %v1369_v1  ;;  %3461 = vmatpush1.msk.msra.mxu1 %vm132_vm5, %v1371_v25  ;;  %v1545_v40 = vsel %vm1544_vm13, %v1537_v31, %v1539_v32 }
  0xb0   :  { %3459 = vmatmul.mubr.msk.f32.vlgmr.msra.gmra.mxu0 %vm128_vm10, %v3456_v2  ;;  %3462 = vmatmul.mubr.msk.f32.vlgmr.msra.gmra.mxu1 %vm128_vm10, %v3456_v2  ;;  %v1558_v57 = vmul.f32 %v3994_v39, %v1545_v40 }
  0xb1   :  { %1643 = vmatprep.mubr.f32.mxu0 %v4306_v4  ;;  %1714 = vmatprep.mubr.f32.mxu1 %v4306_v4 }
  0xb2   :  { %v1541_v44 = vpop.permute.xlu0 %1540  ;;  %v1543_v45 = vpop.permute.xlu1 %1542 }
  0xb3   :  { %v1546_v46 = vsel %vm1544_vm13, %v1539_v32, %v1541_v44  ;;  %v1547_v52 = vsel %vm1544_vm13, %v1541_v44, %v1543_v45  ;;  %v1553_v53 = vsel %vm1544_vm13, %v1543_v45, %v1537_v31 }
  0xb4   :  { %v1559_v54 = vmul.f32 %v3982_v0, %v1546_v46  ;;  %v1560_v55 = vmul.f32 %v3986_v35, %v1547_v52  ;;  %v1561_v56 = vmul.f32 %v3990_v36, %v1553_v53 }
  0xb6   :  { %3464 = vmatprep.subr.msk.mxu0 %vm132_vm5, %v1559_v54  ;;  %3467 = vmatprep.subr.msk.mxu1 %vm132_vm5, %v1561_v56 }
  0xb7   :  { %3465 = vmatpush1.msk.msra.mxu0 %vm132_vm5, %v1558_v57  ;;  %3468 = vmatpush1.msk.msra.mxu1 %vm132_vm5, %v1560_v55  ;;  %vm1787_vm5 = vcmask 64512  }
  0xb8   :  { %3466 = vmatmul.mubr.msk.f32.vlgmr.msra.gmra.mxu0 %vm128_vm10, %v3463_v58  ;;  %3469 = vmatmul.mubr.msk.f32.vlgmr.msra.gmra.mxu1 %vm128_vm10, %v3463_v58 }
  0xb9   :  { %1855 = vmatprep.mubr.f32.mxu0 %v4306_v4  ;;  %1926 = vmatprep.mubr.f32.mxu1 %v4306_v4 }
 0x140   :  { %v211_v59 = vpop.f32.mrf.mxu0  ;;  %v282_v60 = vpop.f32.mrf.mxu1 }
 0x142   :  { %v213_v61 = vpop.f32.mrf.mxu0  ;;  %v284_v12 = vpop.f32.mrf.mxu1 }
 0x148   :  { %v368_v13 = vpop.f32.mrf.mxu0  ;;  %v439_v14 = vpop.f32.mrf.mxu1 }
 0x149   :  { %v369_v54 = vadd.f32 %v368_v13, %v211_v59  ;;  %v440_v55 = vadd.f32 %v439_v14, %v282_v60 }
 0x14a   :  { %v370_v24 = vpop.f32.mrf.mxu0  ;;  %v441_v3 = vpop.f32.mrf.mxu1 }
 0x14b   :  { %v371_v35 = vadd.f32 %v370_v24, %v213_v61  ;;  %v442_v39 = vadd.f32 %v441_v3, %v284_v12  ;;  %v1728_v61 = vpop.permute.xlu0 %1727 }
 0x150   :  { %v553_v25 = vpop.f32.mrf.mxu0  ;;  %v624_v30 = vpop.f32.mrf.mxu1 }
 0x151   :  { %v629_v58 = vadd.f32 %v553_v25, %v369_v54  ;;  %v631_v5 = vadd.f32 %v624_v30, %v440_v55 }
 0x152   :  { %v555_v1 = vpop.f32.mrf.mxu0  ;;  %v626_v2 = vpop.f32.mrf.mxu1 }
 0x153   :  { %v630_v18 = vadd.f32 %v555_v1, %v371_v35  ;;  %v632_v60 = vadd.f32 %v626_v2, %v442_v39 }
 0x158   :  { %v738_v31 = vpop.f32.mrf.mxu0  ;;  %v809_v32 = vpop.f32.mrf.mxu1 }
 0x159   :  { %v814_v9 = vadd.f32 %v738_v31, %v629_v58  ;;  %v816_v10 = vadd.f32 %v809_v32, %v631_v5 }
 0x15a   :  { %v740_v40 = vpop.f32.mrf.mxu0  ;;  %v811_v44 = vpop.f32.mrf.mxu1 }
 0x15b   :  { %v815_v25 = vadd.f32 %v740_v40, %v630_v18  ;;  %v817_v5 = vadd.f32 %v811_v44, %v632_v60 }
 0x15c   :  { %v897_v45 = vpop.f32.mrf.mxu0  ;;  %v968_v46 = vpop.f32.mrf.mxu1 }
 0x15d   :  { %v973_v33 = vadd.f32 %v897_v45, %v814_v9  ;;  %v975_v0 = vadd.f32 %v968_v46, %v816_v10 }
 0x15e   :  { %v899_v52 = vpop.f32.mrf.mxu0  ;;  %v970_v53 = vpop.f32.mrf.mxu1 }
 0x15f   :  { %v974_v10 = vadd.f32 %v899_v52, %v815_v25  ;;  %v976_v35 = vadd.f32 %v970_v53, %v817_v5  ;;  %v3567_v53 = vmov 1  }
 0x160   :  { %v1082_v56 = vpop.f32.mrf.mxu0  ;;  %v1153_v57 = vpop.f32.mrf.mxu1  ;;  %3510 = vset.pattern.permute.xlu0 %v3567_v53 }
 0x161   :  { %v1158_v13 = vadd.f32 %v1082_v56, %v973_v33  ;;  %v1160_v14 = vadd.f32 %v1153_v57, %v975_v0 }
 0x162   :  { %v1084_v4 = vpop.f32.mrf.mxu0  ;;  %v1155_v11 = vpop.f32.mrf.mxu1 }
 0x163   :  { %v1159_v1 = vadd.f32 %v1084_v4, %v974_v10  ;;  %v1161_v18 = vadd.f32 %v1155_v11, %v976_v35 }
 0x168   :  { %v1271_v8 = vpop.f32.mrf.mxu0  ;;  %v1342_v36 = vpop.f32.mrf.mxu1 }
 0x169   :  { %v1347_v30 = vadd.f32 %v1271_v8, %v1158_v13  ;;  %v1349_v54 = vadd.f32 %v1342_v36, %v1160_v14 }
 0x16a   :  { %v1273_v37 = vpop.f32.mrf.mxu0  ;;  %v1344_v16 = vpop.f32.mrf.mxu1 }
 0x16b   :  { %v1348_v39 = vadd.f32 %v1273_v37, %v1159_v1 }
 0x170   :  { %v1456_v34 = vpop.f32.mrf.mxu0  ;;  %v1527_v59 = vpop.f32.mrf.mxu1 }
 0x171   :  { %v1532_v32 = vadd.f32 %v1456_v34, %v1347_v30  ;;  %v1534_v58 = vadd.f32 %v1527_v59, %v1349_v54  ;;  %v1350_v34 = vadd.f32 %v1344_v16, %v1161_v18 }
 0x172   :  { %v1458_v55 = vpop.f32.mrf.mxu0  ;;  %v1529_v31 = vpop.f32.mrf.mxu1 }
 0x173   :  { %v1533_v36 = vadd.f32 %v1458_v55, %v1348_v39  ;;  %v1535_v4 = vadd.f32 %v1529_v31, %v1350_v34 }
 0x178   :  { %v1645_v12 = vpop.f32.mrf.mxu0  ;;  %v1716_v9 = vpop.f32.mrf.mxu1 }
 0x179   :  { %v1721_v24 = vadd.f32 %v1645_v12, %v1532_v32  ;;  %v1723_v3 = vadd.f32 %v1716_v9, %v1534_v58 }
 0x17a   :  { %v1647_v8 = vpop.f32.mrf.mxu0  ;;  %v1718_v44 = vpop.f32.mrf.mxu1 }
 0x17b   :  { %v1730_v45 = vadd.f32 %v1728_v61, %v1721_v24  ;;  %v1732_v33 = vadd.f32 %v1728_v61, %v1723_v3  ;;  %v1722_v40 = vadd.f32 %v1647_v8, %v1533_v36  ;;  %v1724_v37 = vadd.f32 %v1718_v44, %v1535_v4 }
 0x17d   :  { %v4017_v0 = vmax.f32 %v1730_v45, 0.0  ;;  %v4023_v2 = vmax.f32 %v1732_v33, 0.0  ;;  %v1731_v11 = vadd.f32 %v1728_v61, %v1722_v40  ;;  %v1733_v46 = vadd.f32 %v1728_v61, %v1724_v37  ;;  %v3470_v33 = vld [vmem:[%s4300_s2 + $0x8] sm:$0xff] }
 0x17f   :  { %2573 = vrot.lane.b32.xlu0 %v4017_v0, %s3562_s25  ;;  %1767 = vrot.lane.b32.xlu1 %v4017_v0, %s3558_s22  ;;  %v4033_v16 = vmax.f32 %v1731_v11, 0.0  ;;  %v4039_v52 = vmax.f32 %v1733_v46, 0.0 }
 0x183   :  { %2577 = vrot.lane.b32.xlu0 %v4023_v2, %s3562_s25  ;;  %1771 = vrot.lane.b32.xlu1 %v4023_v2, %s3558_s22 }
 0x187   :  { %2745 = vrot.lane.b32.xlu0 %v4017_v0, %s3563_s26  ;;  %1745 = vrot.lane.b32.xlu1 %v4017_v0, %s3559_s0 }
 0x18b   :  { %1769 = vrot.lane.b32.xlu0 %v4033_v16, %s3558_s22  ;;  %1749 = vrot.lane.b32.xlu1 %v4023_v2, %s3559_s0 }
 0x18f   :  { %1739 = vrot.lane.b32.xlu0 %v4039_v52, %s3559_s0  ;;  %2081 = vrot.lane.b32.xlu1 %v4017_v0, %s3560_s23 }
 0x193   :  { %1747 = vrot.lane.b32.xlu0 %v4033_v16, %s3559_s0  ;;  %2085 = vrot.lane.b32.xlu1 %v4023_v2, %s3560_s23 }
 0x197   :  { %2078 = vrot.lane.b32.xlu0 %v4039_v52, %s3560_s23  ;;  %2253 = vrot.lane.b32.xlu1 %v4017_v0, %s3561_s24 }
 0x19b   :  { %2083 = vrot.lane.b32.xlu0 %v4033_v16, %s3560_s23  ;;  %2257 = vrot.lane.b32.xlu1 %v4023_v2, %s3561_s24 }
 0x19f   :  { %2250 = vrot.lane.b32.xlu0 %v4039_v52, %s3561_s24  ;;  %1764 = vrot.lane.b32.xlu1 %v4039_v52, %s3558_s22 }
 0x1a3   :  { %2255 = vrot.lane.b32.xlu0 %v4033_v16, %s3561_s24  ;;  %2575 = vrot.lane.b32.xlu1 %v4033_v16, %s3562_s25 }
 0x1a7   :  { %2749 = vrot.lane.b32.xlu0 %v4023_v2, %s3563_s26  ;;  %2579 = vrot.lane.b32.xlu1 %v4039_v52, %s3562_s25 }
 0x1ab   :  { %2917 = vrot.lane.b32.xlu0 %v4017_v0, %s3564_s27  ;;  %2747 = vrot.lane.b32.xlu1 %v4033_v16, %s3563_s26 }
 0x1af   :  { %2921 = vrot.lane.b32.xlu0 %v4023_v2, %s3564_s27  ;;  %2751 = vrot.lane.b32.xlu1 %v4039_v52, %s3563_s26 }
 0x1b3   :  { %3089 = vrot.lane.b32.xlu0 %v4017_v0, %s3566_s28  ;;  %2919 = vrot.lane.b32.xlu1 %v4033_v16, %s3564_s27 }
 0x1b7   :  { %3093 = vrot.lane.b32.xlu0 %v4023_v2, %s3566_s28  ;;  %2923 = vrot.lane.b32.xlu1 %v4039_v52, %s3564_s27 }
 0x1bb   :  { %3091 = vrot.lane.b32.xlu1 %v4033_v16, %s3566_s28  ;;  %3262 = vperm.xlu0 %3510, %v3688_v6  }
 0x1bf   :  { %3095 = vrot.lane.b32.xlu1 %v4039_v52, %s3566_s28 }
 0x1f1   :  { %v4090_v56 = vpop.permute.xlu0 %2573  ;;  %v1768_v57 = vpop.permute.xlu1 %1767 }
 0x1f5   :  { %v4092_v59 = vpop.permute.xlu0 %2577  ;;  %v1772_v60 = vpop.permute.xlu1 %1771 }
 0x1f9   :  { %v4094_v13 = vpop.permute.xlu0 %2745  ;;  %v1746_v14 = vpop.permute.xlu1 %1745 }
 0x1fd   :  { %v1770_v25 = vpop.permute.xlu0 %1769  ;;  %v1750_v30 = vpop.permute.xlu1 %1749 }
 0x1fe   :  { %v1773_v54 = vsel %vm113_vm4, %v1768_v57, %v1770_v25  ;;  %v1774_v3 = vsel %vm113_vm4, %v1770_v25, %v1772_v60 }
 0x1ff   :  { %v1782_v55 = vmul.f32 %v1773_v54, %v3729_v28  ;;  %v1783_v36 = vmul.f32 %v1774_v3, %v3726_v27 }
 0x201   :  { %v1740_v31 = vpop.permute.xlu0 %1739  ;;  %1821 = vmatprep.subr.mxu0 %v1782_v55  ;;  %v2082_v6 = vpop.permute.xlu1 %2081 }
 0x202   :  { %v1753_v8 = vsel %vm86_vm11, %v1750_v30, %v1740_v31  ;;  %v1758_v18 = vsel %vm86_vm11, %v1740_v31, %v1746_v14 }
 0x203   :  { %v1759_v11 = vmul.f32 %v1758_v18, %v3783_v51  ;;  %v1762_v37 = vmul.f32 %v1753_v8, %v3777_v50  ;;  %v4339_v8 = vld [vmem:[#allocation12_spill] sm:$0xff] }
 0x205   :  { %v1748_v5 = vpop.permute.xlu0 %1747  ;;  %v2086_v32 = vpop.permute.xlu1 %2085 }
 0x206   :  { %v1751_v45 = vsel %vm86_vm11, %v1746_v14, %v1748_v5  ;;  %v1752_v34 = vsel %vm86_vm11, %v1748_v5, %v1750_v30 }
 0x207   :  { %v1761_v27 = vmul.f32 %v1752_v34, %v3773_v49  ;;  %v1763_v49 = vld [vmem:[%s4300_s2] sm:$0xff] }
 0x209   :  { %v2079_v58 = vpop.permute.xlu0 %2078  ;;  %v2254_v61 = vpop.permute.xlu1 %2253 }
 0x20a   :  { %v2089_v4 = vsel %vm453_vm0, %v2086_v32, %v2079_v58  ;;  %v2094_v46 = vsel %vm453_vm0, %v2079_v58, %v2082_v6 }
 0x20b   :  { %v2095_v14 = vmul.f32 %v2094_v46, %v3830_v23 }
 0x20d   :  { %v2084_v12 = vpop.permute.xlu0 %2083  ;;  %v2258_v9 = vpop.permute.xlu1 %2257 }
 0x20e   :  { %v2087_v40 = vsel %vm453_vm0, %v2082_v6, %v2084_v12 }
 0x20f   :  { %v2096_v53 = vmul.f32 %v2087_v40, %v3816_v20  ;;  %v3487_v40 = vld [vmem:[%s4300_s2 + $0x30] sm:$0xff] }
 0x211   :  { %v2251_v10 = vpop.permute.xlu0 %2250  ;;  %v1765_v24 = vpop.permute.xlu1 %1764 }
 0x212   :  { %v1775_v35 = vsel %vm113_vm4, %v1772_v60, %v1765_v24  ;;  %v1780_v1 = vsel %vm113_vm4, %v1765_v24, %v1768_v57  ;;  %v2088_v57 = vsel %vm453_vm0, %v2084_v12, %v2086_v32  ;;  %v2261_v20 = vsel %vm642_vm1, %v2258_v9, %v2251_v10 }
 0x213   :  { %v1781_v28 = vmul.f32 %v1780_v1, %v3723_v26  ;;  %v1784_v39 = vmul.f32 %v1775_v35, %v3732_v29  ;;  %v1760_v29 = vmul.f32 %v1751_v45, %v3769_v48  ;;  %v2098_v48 = vmul.f32 %v2089_v4, %v3824_v22 }
 0x214   :  { %v4336_v22 = vmov 0.0   ;;  %v2097_v25 = vmul.f32 %v2088_v57, %v3820_v21  ;;  %v2266_v30 = vsel %vm642_vm1, %v2251_v10, %v2254_v61  ;;  %v2270_v55 = vmul.f32 %v2261_v20, %v3753_v43  ;;  %v3475_v21 = vld [vmem:[%s4300_s2 + $0x10] sm:$0xff] }
 0x215   :  { %v2256_v44 = vpop.permute.xlu0 %2255  ;;  %1822 = vmatpush1.msra.mxu0 %v1781_v28  ;;  %1892 = vmatprep.subr.mxu1 %v1784_v39  ;;  %v2576_v26 = vpop.permute.xlu1 %2575  ;;  %v4338_v28 = vld [vmem:[#allocation16_spill] sm:$0xff] }
 0x216   :  { %3471 = vmatmul.mubr.msk.f32.vlgmr.msra.gmra.mxu0 %vm1787_vm5, %v3470_v33  ;;  %1893 = vmatpush1.msra.mxu1 %v1783_v36  ;;  %v2259_v60 = vsel %vm642_vm1, %v2254_v61, %v2256_v44  ;;  %v2260_v31 = vsel %vm642_vm1, %v2256_v44, %v2258_v9  ;;  %v2582_v5 = vsel %vm985_vm2, %v2576_v26, %v4092_v59 }
 0x217   :  { %1966 = vmatprep.subr.mxu0 %v1760_v29  ;;  %3472 = vmatmul.mubr.msk.f32.vlgmr.msra.gmra.mxu1 %vm1787_vm5, %v3470_v33  ;;  %v2268_v54 = vmul.f32 %v2259_v60, %v3747_v41  ;;  %v2267_v41 = vmul.f32 %v2266_v30, %v3761_v47  ;;  %v2269_v43 = vmul.f32 %v2260_v31, %v3750_v42  ;;  %v3478_v47 = vld [vmem:[%s4300_s2 + $0x18] sm:$0xff]  ;;  %v3493_v30 = vld [vmem:[%s4300_s2 + $0x40] sm:$0xff] }
 0x218   :  { %1967 = vmatpush1.msra.mxu0 %v1759_v11  ;;  %2037 = vmatprep.subr.mxu1 %v1762_v37  ;;  %v2581_v42 = vsel %vm985_vm2, %v4090_v56, %v2576_v26  ;;  %v2591_v12 = vmul.f32 %v2582_v5, %v3796_v62  ;;  %v3481_v62 = vld [vmem:[%s4300_s2 + $0x20] sm:$0xff]  ;;  %v4340_v29 = vld [vmem:[#allocation15_spill] sm:$0xff]  ;;  %v4341_v11 = vld [vmem:[#allocation17_spill] sm:$0xff] }
 0x219   :  { %v4124_v51 = vpop.permute.xlu0 %2749  ;;  %v2580_v50 = vpop.permute.xlu1 %2579  ;;  %2038 = vmatpush1.msra.mxu1 %v1761_v27  ;;  %2134 = vmatprep.subr.mxu0 %v2096_v53  ;;  %v4342_v27 = vld [vmem:[#allocation13_spill] sm:$0xff]  ;;  %v4343_v53 = vld [vmem:[#allocation20_spill] sm:$0xff]  ;;  %v3490_v60 = vld [vmem:[%s4300_s2 + $0x38] sm:$0xff] }
 0x21a   :  { %2000 = vmatprep.mubr.f32.mxu0 %v4336_v22  ;;  %2205 = vmatprep.subr.mxu1 %v2098_v48  ;;  %v2589_v61 = vsel %vm985_vm2, %v2580_v50, %v4090_v56  ;;  %v2583_v9 = vsel %vm985_vm2, %v4092_v59, %v2580_v50 }
 0x21b   :  { %3473 = vmatmul.mubr.msk.f32.vlgmr.msra.gmra.mxu0 %vm1787_vm5, %v1763_v49  ;;  %2071 = vmatprep.mubr.f32.mxu1 %v4336_v22  ;;  %v2593_v10 = vmul.f32 %v2589_v61, %v3802_v7  ;;  %v2590_v7 = vmul.f32 %v2581_v42, %v3808_v15 }
 0x21c   :  { %2135 = vmatpush1.msra.mxu0 %v2095_v14  ;;  %3474 = vmatmul.mubr.msk.f32.vlgmr.msra.gmra.mxu1 %vm1787_vm5, %v1763_v49  ;;  %v4344_v49 = vld [vmem:[#allocation18_spill] sm:$0xff]  ;;  %v4345_v14 = vld [vmem:[#allocation19_spill] sm:$0xff] }
 0x21d   :  { %v2918_v23 = vpop.permute.xlu0 %2917  ;;  %v2748_v6 = vpop.permute.xlu1 %2747  ;;  %2206 = vmatpush1.msra.mxu1 %v2097_v25  ;;  %2306 = vmatprep.subr.mxu0 %v2268_v54 }
 0x21e   :  { %2377 = vmatprep.subr.mxu1 %v2270_v55  ;;  %2168 = vmatprep.mubr.f32.mxu0 %v4336_v22  ;;  %v2753_v24 = vsel %vm1170_vm9, %v4094_v13, %v2748_v6 }
 0x21f   :  { %3476 = vmatmul.mubr.msk.f32.vlgmr.msra.gmra.mxu0 %vm1787_vm5, %v3475_v21  ;;  %2239 = vmatprep.mubr.f32.mxu1 %v4336_v22  ;;  %v2762_v1 = vmul.f32 %v2753_v24, %v3940_v38 }
 0x220   :  { %2307 = vmatpush1.msra.mxu0 %v2267_v41  ;;  %3477 = vmatmul.mubr.msk.f32.vlgmr.msra.gmra.mxu1 %vm1787_vm5, %v3475_v21 }
 0x221   :  { %v2922_v32 = vpop.permute.xlu0 %2921  ;;  %v2752_v58 = vpop.permute.xlu1 %2751  ;;  %2378 = vmatpush1.msra.mxu1 %v2269_v43  ;;  %2457 = vmatprep.subr.mxu0 %v4033_v16  ;;  %v2754_v16 = vsel %vm1170_vm9, %v2748_v6, %v4124_v51 }
 0x222   :  { %2528 = vmatprep.subr.mxu1 %v4039_v52  ;;  %2340 = vmatprep.mubr.f32.mxu0 %v4336_v22  ;;  %v2761_v56 = vsel %vm1170_vm9, %v2752_v58, %v4094_v13  ;;  %v2763_v3 = vmul.f32 %v2754_v16, %v3927_v17  ;;  %v3484_v13 = vld [vmem:[%s4300_s2 + $0x28] sm:$0xff]  ;;  %s3568_s2 = smov [#allocation2]  }
 0x223   :  { %3479 = vmatmul.mubr.msk.f32.vlgmr.msra.gmra.mxu0 %vm1787_vm5, %v3478_v47  ;;  %2411 = vmatprep.mubr.f32.mxu1 %v4336_v22  ;;  %v2765_v15 = vmul.f32 %v2761_v56, %v3935_v19  ;;  %v4337_v19 = vld [vmem:[#allocation14_spill] sm:$0xff] }
 0x224   :  { %2458 = vmatpush1.msra.mxu0 %v4017_v0  ;;  %3480 = vmatmul.mubr.msk.f32.vlgmr.msra.gmra.mxu1 %vm1787_vm5, %v3478_v47  ;;  %v2592_v0 = vmul.f32 %v2583_v9, %v3799_v63 }
 0x225   :  { %v2920_v52 = vpop.permute.xlu1 %2919  ;;  %2529 = vmatpush1.msra.mxu1 %v4023_v2  ;;  %2629 = vmatprep.subr.mxu0 %v2591_v12  ;;  %v3090_v59 = vpop.permute.xlu0 %3089  ;;  %v2755_v2 = vsel %vm1170_vm9, %v4124_v51, %v2752_v58 }
 0x226   :  { %2700 = vmatprep.subr.mxu1 %v2593_v10  ;;  %2491 = vmatprep.mubr.f32.mxu0 %v4336_v22  ;;  %v2926_v35 = vsel %vm1359_vm12, %v2920_v52, %v2922_v32  ;;  %v2764_v39 = vmul.f32 %v2755_v2, %v4338_v28  ;;  %v2925_v33 = vsel %vm1359_vm12, %v2918_v23, %v2920_v52 }
 0x227   :  { %3482 = vmatmul.mubr.msk.f32.vlgmr.msra.gmra.mxu0 %vm1787_vm5, %v3481_v62  ;;  %2562 = vmatprep.mubr.f32.mxu1 %v4336_v22  ;;  %v2935_v18 = vmul.f32 %v2926_v35, %v4339_v8  ;;  %v2934_v4 = vmul.f32 %v2925_v33, %v4340_v29 }
 0x228   :  { %2630 = vmatpush1.msra.mxu0 %v2590_v7  ;;  %3483 = vmatmul.mubr.msk.f32.vlgmr.msra.gmra.mxu1 %vm1787_vm5, %v3481_v62 }
 0x229   :  { %v2924_v63 = vpop.permute.xlu1 %2923  ;;  %2701 = vmatpush1.msra.mxu1 %v2592_v0  ;;  %2801 = vmatprep.subr.mxu0 %v2763_v3  ;;  %v3094_v36 = vpop.permute.xlu0 %3093 }
 0x22a   :  { %v2933_v17 = vsel %vm1359_vm12, %v2924_v63, %v2918_v23  ;;  %2872 = vmatprep.subr.mxu1 %v2765_v15  ;;  %2663 = vmatprep.mubr.f32.mxu0 %v4336_v22  ;;  %v2927_v34 = vsel %vm1359_vm12, %v2922_v32, %v2924_v63 }
 0x22b   :  { %v2937_v45 = vmul.f32 %v2933_v17, %v4337_v19  ;;  %3485 = vmatmul.mubr.msk.f32.vlgmr.msra.gmra.mxu0 %vm1787_vm5, %v3484_v13  ;;  %2734 = vmatprep.mubr.f32.mxu1 %v4336_v22  ;;  %v2936_v46 = vmul.f32 %v2927_v34, %v4342_v27 }
 0x22c   :  { %2802 = vmatpush1.msra.mxu0 %v2762_v1  ;;  %3486 = vmatmul.mubr.msk.f32.vlgmr.msra.gmra.mxu1 %vm1787_vm5, %v3484_v13 }
 0x22d   :  { %v3092_v38 = vpop.permute.xlu1 %3091  ;;  %2873 = vmatpush1.msra.mxu1 %v2764_v39  ;;  %2973 = vmatprep.subr.mxu0 %v2935_v18 }
 0x22e   :  { %v3097_v44 = vsel %vm1544_vm13, %v3090_v59, %v3092_v38  ;;  %v3098_v26 = vsel %vm1544_vm13, %v3092_v38, %v3094_v36  ;;  %2835 = vmatprep.mubr.f32.mxu0 %v4336_v22  ;;  %3044 = vmatprep.subr.mxu1 %v2937_v45 }
 0x22f   :  { %v3107_v37 = vmul.f32 %v3098_v26, %v4341_v11  ;;  %3488 = vmatmul.mubr.msk.f32.vlgmr.msra.gmra.mxu0 %vm1787_vm5, %v3487_v40  ;;  %2906 = vmatprep.mubr.f32.mxu1 %v4336_v22  ;;  %v3106_v48 = vmul.f32 %v3097_v44, %v4343_v53 }
 0x230   :  { %2974 = vmatpush1.msra.mxu0 %v2934_v4  ;;  %3489 = vmatmul.mubr.msk.f32.vlgmr.msra.gmra.mxu1 %vm1787_vm5, %v3487_v40 }
 0x231   :  { %v3096_v57 = vpop.permute.xlu1 %3095  ;;  %3045 = vmatpush1.msra.mxu1 %v2936_v46  ;;  %3007 = vmatprep.mubr.f32.mxu0 %v4336_v22 }
 0x232   :  { %v3099_v51 = vsel %vm1544_vm13, %v3094_v36, %v3096_v57  ;;  %v3105_v50 = vsel %vm1544_vm13, %v3096_v57, %v3090_v59  ;;  %3145 = vmatprep.subr.mxu0 %v3107_v37  ;;  %3078 = vmatprep.mubr.f32.mxu1 %v4336_v22 }
 0x233   :  { %v3108_v20 = vmul.f32 %v3099_v51, %v4344_v49  ;;  %v3109_v25 = vmul.f32 %v3105_v50, %v4345_v14  ;;  %3491 = vmatmul.mubr.msk.f32.vlgmr.msra.gmra.mxu0 %vm1787_vm5, %v3490_v60 }
 0x234   :  { %3146 = vmatpush1.msra.mxu0 %v3106_v48  ;;  %3492 = vmatmul.mubr.msk.f32.vlgmr.msra.gmra.mxu1 %vm1787_vm5, %v3490_v60 }
 0x235   :  { %3179 = vmatprep.mubr.f32.mxu0 %v4336_v22  ;;  %3216 = vmatprep.subr.mxu1 %v3109_v25 }
 0x236   :  { %3217 = vmatpush1.msra.mxu1 %v3108_v20  ;;  %3250 = vmatprep.mubr.f32.mxu1 %v4336_v22  ;;  %v3263_v50 = vpop.permute.xlu0 %3262 }
 0x237   :  { %3494 = vmatmul.mubr.msk.f32.vlgmr.msra.gmra.mxu0 %vm1787_vm5, %v3493_v30 }
 0x238   :  { %3495 = vmatmul.mubr.msk.f32.vlgmr.msra.gmra.mxu1 %vm1787_vm5, %v3493_v30 }
 0x2d6   :  { %v1857_v54 = vpop.f32.mrf.mxu0 }
 0x2d7   :  { %v1928_v55 = vpop.f32.mrf.mxu1 }
 0x2d8   :  { %v1859_v31 = vpop.f32.mrf.mxu0 }
 0x2d9   :  { %v1930_v23 = vpop.f32.mrf.mxu1 }
 0x2db   :  { %v2002_v6 = vpop.f32.mrf.mxu0 }
 0x2dc   :  { %v2073_v21 = vpop.f32.mrf.mxu1  ;;  %v2003_v62 = vadd.f32 %v2002_v6, %v1857_v54 }
 0x2dd   :  { %v2004_v41 = vpop.f32.mrf.mxu0  ;;  %v2074_v16 = vadd.f32 %v2073_v21, %v1928_v55 }
 0x2de   :  { %v2075_v43 = vpop.f32.mrf.mxu1  ;;  %v2005_v59 = vadd.f32 %v2004_v41, %v1859_v31 }
 0x2df   :  { %v2170_v5 = vpop.f32.mrf.mxu0  ;;  %v2076_v15 = vadd.f32 %v2075_v43, %v1930_v23 }
 0x2e0   :  { %v2241_v32 = vpop.f32.mrf.mxu1  ;;  %v2246_v0 = vadd.f32 %v2170_v5, %v2003_v62 }
 0x2e1   :  { %v2172_v58 = vpop.f32.mrf.mxu0  ;;  %v2248_v3 = vadd.f32 %v2241_v32, %v2074_v16 }
 0x2e2   :  { %v2243_v47 = vpop.f32.mrf.mxu1  ;;  %v2247_v35 = vadd.f32 %v2172_v58, %v2005_v59 }
 0x2e3   :  { %v2342_v61 = vpop.f32.mrf.mxu0  ;;  %v2249_v19 = vadd.f32 %v2243_v47, %v2076_v15 }
 0x2e4   :  { %v2413_v42 = vpop.f32.mrf.mxu1  ;;  %v2418_v63 = vadd.f32 %v2342_v61, %v2246_v0 }
 0x2e5   :  { %v2344_v12 = vpop.f32.mrf.mxu0  ;;  %v2420_v17 = vadd.f32 %v2413_v42, %v2248_v3 }
 0x2e6   :  { %v2415_v22 = vpop.f32.mrf.mxu1  ;;  %v2419_v45 = vadd.f32 %v2344_v12, %v2247_v35 }
 0x2e7   :  { %v2493_v9 = vpop.f32.mrf.mxu0  ;;  %v2421_v18 = vadd.f32 %v2415_v22, %v2249_v19  ;;  %v4348_v19 = vld [vmem:[#allocation9_spill] sm:$0xff] }
 0x2e8   :  { %v2564_v10 = vpop.f32.mrf.mxu1  ;;  %v2569_v28 = vadd.f32 %v2493_v9, %v2418_v63  ;;  %v4346_v63 = vld [vmem:[#allocation8_spill] sm:$0xff] }
 0x2e9   :  { %v2495_v52 = vpop.f32.mrf.mxu0  ;;  %v2571_v33 = vadd.f32 %v2564_v10, %v2420_v17  ;;  %v4347_v17 = vld [vmem:[#allocation10_spill] sm:$0xff] }
 0x2ea   :  { %v2566_v56 = vpop.f32.mrf.mxu1  ;;  %v2570_v36 = vadd.f32 %v2495_v52, %v2419_v45  ;;  %v3366_v45 = vand.u32 255, %v4348_v19 }
 0x2eb   :  { %v2665_v7 = vpop.f32.mrf.mxu0  ;;  %v2572_v26 = vadd.f32 %v2566_v56, %v2421_v18 }
 0x2ec   :  { %v2736_v24 = vpop.f32.mrf.mxu1  ;;  %v2741_v34 = vadd.f32 %v2665_v7, %v2569_v28  ;;  %v4349_v28 = vld [vmem:[#allocation11_spill] sm:$0xff] }
 0x2ed   :  { %v2667_v2 = vpop.f32.mrf.mxu0  ;;  %v2743_v40 = vadd.f32 %v2736_v24, %v2571_v33  ;;  %v4350_v33 = vmov 0  }
 0x2ee   :  { %v2738_v13 = vpop.f32.mrf.mxu1  ;;  %v2742_v29 = vadd.f32 %v2667_v2, %v2570_v36 }
 0x2ef   :  { %v2837_v1 = vpop.f32.mrf.mxu0  ;;  %v2744_v46 = vadd.f32 %v2738_v13, %v2572_v26  ;;  %v3364_v13 = vand.u32 255, %v4346_v63 }
 0x2f0   :  { %v2908_v39 = vpop.f32.mrf.mxu1  ;;  %v2913_v4 = vadd.f32 %v2837_v1, %v2741_v34  ;;  %v3365_v1 = vand.u32 255, %v4347_v17 }
 0x2f1   :  { %v2839_v8 = vpop.f32.mrf.mxu0  ;;  %v2915_v37 = vadd.f32 %v2908_v39, %v2743_v40  ;;  %v3367_v39 = vand.u32 255, %v4349_v28 }
 0x2f2   :  { %v2910_v38 = vpop.f32.mrf.mxu1  ;;  %v2914_v53 = vadd.f32 %v2839_v8, %v2742_v29 }
 0x2f3   :  { %v3009_v44 = vpop.f32.mrf.mxu0  ;;  %v2916_v49 = vadd.f32 %v2910_v38, %v2744_v46 }
 0x2f4   :  { %v3080_v11 = vpop.f32.mrf.mxu1  ;;  %v3085_v48 = vadd.f32 %v3009_v44, %v2913_v4 }
 0x2f5   :  { %v3011_v27 = vpop.f32.mrf.mxu0  ;;  %v3087_v60 = vadd.f32 %v3080_v11, %v2915_v37 }
 0x2f6   :  { %v3082_v57 = vpop.f32.mrf.mxu1  ;;  %v3086_v20 = vadd.f32 %v3011_v27, %v2914_v53 }
 0x2f7   :  { %v3181_v51 = vpop.f32.mrf.mxu0  ;;  %v3088_v55 = vadd.f32 %v3082_v57, %v2916_v49 }
 0x2f8   :  { %v3257_v14 = vadd.f32 %v3181_v51, %v3085_v48  ;;  %v3252_v25 = vpop.f32.mrf.mxu1 }
 0x2f9   :  { %v3259_v30 = vadd.f32 %v3252_v25, %v3087_v60  ;;  %v3183_v54 = vpop.f32.mrf.mxu0 }
 0x2fa   :  { %v3265_v31 = vadd.f32 %v3263_v50, %v3257_v14  ;;  %v3258_v23 = vadd.f32 %v3183_v54, %v3086_v20  ;;  %v3254_v6 = vpop.f32.mrf.mxu1 }
 0x2fb   :  { %v3267_v21 = vadd.f32 %v3263_v50, %v3259_v30  ;;  %v3260_v5 = vadd.f32 %v3254_v6, %v3088_v55 }
 0x2fc   :  { %v3269_v41 = vmax.f32 %v3265_v31, 0.0  ;;  %v3266_v43 = vadd.f32 %v3263_v50, %v3258_v23 }
 0x2fd   :  { %v4235_v32 = vmax.f32 %v3267_v21, 0.0  ;;  %v3268_v47 = vadd.f32 %v3263_v50, %v3260_v5 }
 0x2fe   :  { %3277 = vrot.lane.b32.xlu1 %v3269_v41, %s3562_s25  ;;  %v3270_v58 = vmax.f32 %v3266_v43, 0.0 }
 0x2ff   :  { %3281 = vrot.lane.b32.xlu0 %v4235_v32, %s3562_s25  ;;  %v3272_v61 = vmax.f32 %v3268_v47, 0.0 }
 0x302   :  { %3279 = vrot.lane.b32.xlu1 %v3270_v58, %s3562_s25 }
 0x303   :  { %3294 = vrot.lane.b32.xlu0 %v3269_v41, %s3564_s27 }
 0x306   :  { %3283 = vrot.lane.b32.xlu1 %v3272_v61, %s3562_s25  ;;  %s3386_s25 = sshll.u32 %s3568_s2, 4  ;;  %s3387_s25 = int_to_ptr.vmem [resolvable:$true] %s3386_s25 }
 0x307   :  { %3298 = vrot.lane.b32.xlu0 %v4235_v32, %s3564_s27  ;;  %s3513_s16 = scalar_lea.vmem %s3387_s25, 512  ;;  %p3518_p1 = scmp.lt.s32.totalorder %s3387_s25, %s3387_s25 }
 0x308   :  { %p3514_p0 = scmp.ne.s32.totalorder %s3387_s25, %s3513_s16  ;;  %p3519_p2 = scmp.lt.s32.totalorder %s3513_s16, %s3513_s16 }
 0x30a   :  { %3296 = vrot.lane.b32.xlu1 %v3270_v58, %s3564_s27  ;;  %p3520_p3 = por %p3519_p2, %p3518_p1 }
 0x30b   :  { %3311 = vrot.lane.b32.xlu0 %v3269_v41, %s3566_s28 }
 0x30c   :  { %p3521_p4 = pnand %p3520_p3, %p3514_p0 }
 0x30e   :  { %3300 = vrot.lane.b32.xlu1 %v3272_v61, %s3564_s27  ;;  %s3569_s27 = smov [#allocation4]  }
 0x30f   :  { %3315 = vrot.lane.b32.xlu0 %v4235_v32, %s3566_s28 }
 0x312   :  { %3313 = vrot.lane.b32.xlu1 %v3270_v58, %s3566_s28 }
 0x316   :  { %3317 = vrot.lane.b32.xlu1 %v3272_v61, %s3566_s28  ;;  %s3396_s28 = sshll.u32 %s3569_s27, 4  ;;  %s3397_s28 = int_to_ptr.vmem [resolvable:$true] %s3396_s28 }
 0x370   :  { %v3278_v42 = vpop.permute.xlu1 %3277 }
 0x371   :  { %v3282_v12 = vpop.permute.xlu0 %3281 }
 0x374   :  { %v3280_v22 = vpop.permute.xlu1 %3279 }
 0x375   :  { %v3295_v9 = vpop.permute.xlu0 %3294  ;;  %v3285_v52 = vsel %vm985_vm2, %v3278_v42, %v3280_v22  ;;  %v3286_v62 = vsel %vm985_vm2, %v3280_v22, %v3282_v12 }
 0x376   :  { %vm3328_vm4 = vcmp.gt.f32.partialorder %v3285_v52, %v3269_v41  ;;  %vm3329_vm10 = vcmp.gt.f32.partialorder %v3286_v62, %v3270_v58 }
 0x377   :  { %v3336_v2 = vsel %vm3328_vm4, %v3285_v52, %v3269_v41  ;;  %v3337_v15 = vsel %vm3329_vm10, %v3286_v62, %v3270_v58  ;;  %v3332_v8 = vsel %vm3328_vm4, 1, %v4350_v33  ;;  %v3333_v18 = vsel %vm3329_vm10, 1, %v4350_v33 }
 0x378   :  { %v3284_v10 = vpop.permute.xlu1 %3283 }
 0x379   :  { %v3299_v16 = vpop.permute.xlu0 %3298  ;;  %v3287_v7 = vsel %vm985_vm2, %v3282_v12, %v3284_v10  ;;  %v3293_v59 = vsel %vm985_vm2, %v3284_v10, %v3278_v42 }
 0x37a   :  { %vm3330_vm11 = vcmp.gt.f32.partialorder %v3287_v7, %v4235_v32  ;;  %vm3331_vm14 = vcmp.gt.f32.partialorder %v3293_v59, %v3272_v61 }
 0x37b   :  { %v3338_v44 = vsel %vm3330_vm11, %v3287_v7, %v4235_v32  ;;  %v3339_v26 = vsel %vm3331_vm14, %v3293_v59, %v3272_v61  ;;  %v3334_v51 = vsel %vm3330_vm11, 1, %v4350_v33  ;;  %v3335_v50 = vsel %vm3331_vm14, 1, %v4350_v33 }
 0x37c   :  { %v3297_v56 = vpop.permute.xlu1 %3296 }
 0x37d   :  { %v3302_v0 = vsel %vm1359_vm12, %v3295_v9, %v3297_v56  ;;  %v3303_v24 = vsel %vm1359_vm12, %v3297_v56, %v3299_v16  ;;  %v3312_v3 = vpop.permute.xlu0 %3311 }
 0x37e   :  { %vm3340_vm15 = vcmp.gt.f32.partialorder %v3302_v0, %v3336_v2  ;;  %vm3341_vm0 = vcmp.gt.f32.partialorder %v3303_v24, %v3337_v15 }
 0x37f   :  { %v3344_v38 = vsel %vm3340_vm15, 16, %v3332_v8  ;;  %v3345_v40 = vsel %vm3341_vm0, 16, %v3333_v18  ;;  %v3348_v11 = vsel %vm3340_vm15, %v3302_v0, %v3336_v2  ;;  %v3349_v37 = vsel %vm3341_vm0, %v3303_v24, %v3337_v15 }
 0x380   :  { %v3301_v35 = vpop.permute.xlu1 %3300 }
 0x381   :  { %v3304_v36 = vsel %vm1359_vm12, %v3299_v16, %v3301_v35  ;;  %v3310_v34 = vsel %vm1359_vm12, %v3301_v35, %v3295_v9  ;;  %v3316_v29 = vpop.permute.xlu0 %3315 }
 0x382   :  { %vm3342_vm1 = vcmp.gt.f32.partialorder %v3304_v36, %v3338_v44  ;;  %vm3343_vm2 = vcmp.gt.f32.partialorder %v3310_v34, %v3339_v26 }
 0x383   :  { %v3350_v25 = vsel %vm3342_vm1, %v3304_v36, %v3338_v44  ;;  %v3351_v30 = vsel %vm3343_vm2, %v3310_v34, %v3339_v26  ;;  %v3346_v31 = vsel %vm3342_vm1, 16, %v3334_v51  ;;  %v3347_v23 = vsel %vm3343_vm2, 16, %v3335_v50 }
 0x384   :  { %v3314_v4 = vpop.permute.xlu1 %3313 }
 0x385   :  { %v3319_v27 = vsel %vm1544_vm13, %v3312_v3, %v3314_v4  ;;  %v3320_v46 = vsel %vm1544_vm13, %v3314_v4, %v3316_v29 }
 0x386   :  { %vm3352_vm3 = vcmp.gt.f32.partialorder %v3319_v27, %v3348_v11  ;;  %vm3353_vm6 = vcmp.gt.f32.partialorder %v3320_v46, %v3349_v37 }
 0x387   :  { %v3356_v53 = vsel %vm3352_vm3, 17, %v3344_v38  ;;  %v3357_v48 = vsel %vm3353_vm6, 17, %v3345_v40  ;;  %v3360_v57 = vsel %vm3352_vm3, %v3319_v27, %v3348_v11  ;;  %v3361_v60 = vsel %vm3353_vm6, %v3320_v46, %v3349_v37 }
 0x388   :  { %3368 = vst [vmem:[#allocation2] sm:$0xff] %v3360_v57  ;;  %3369 = vst [vmem:[#allocation2 + $0x8] sm:$0xff] %v3361_v60  ;;  %v3372_v49 = vadd.s32 %v3364_v13, %v3356_v53  ;;  %v3373_v20 = vadd.s32 %v3365_v1, %v3357_v48  ;;  %v3318_v14 = vpop.permute.xlu1 %3317 }
 0x389   :  { %v3321_v54 = vsel %vm1544_vm13, %v3316_v29, %v3318_v14  ;;  %v3327_v55 = vsel %vm1544_vm13, %v3318_v14, %v3312_v3 }
 0x38a   :  { %3376 = vst [vmem:[#allocation4] sm:$0xff] %v3372_v49  ;;  %3377 = vst [vmem:[#allocation4 + $0x8] sm:$0xff] %v3373_v20  ;;  %vm3354_vm7 = vcmp.gt.f32.partialorder %v3321_v54, %v3350_v25  ;;  %vm3355_vm8 = vcmp.gt.f32.partialorder %v3327_v55, %v3351_v30 }
 0x38b   :  { %v3358_v6 = vsel %vm3354_vm7, 17, %v3346_v31  ;;  %v3359_v21 = vsel %vm3355_vm8, 17, %v3347_v23  ;;  %v3362_v41 = vsel %vm3354_vm7, %v3321_v54, %v3350_v25  ;;  %v3363_v43 = vsel %vm3355_vm8, %v3327_v55, %v3351_v30 }
 0x38c   :  { %3370 = vst [vmem:[#allocation2 + $0x10] sm:$0xff] %v3362_v41  ;;  %3371 = vst [vmem:[#allocation2 + $0x18] sm:$0xff] %v3363_v43  ;;  %v3374_v5 = vadd.s32 %v3366_v45, %v3358_v6  ;;  %v3375_v32 = vadd.s32 %v3367_v39, %v3359_v21 }
 0x38d   :  { %3524 = shalt.err (!%p3521_p4)
}
 0x38e   :  { %3389 = dma.vmem_to_hbm [thread:$0]  %s3387_s25, 512, %s4302_s4, [#allocation3]   ;;  %3378 = vst [vmem:[#allocation4 + $0x10] sm:$0xff] %v3374_v5  ;;  %3379 = vst [vmem:[#allocation4 + $0x18] sm:$0xff] %v3375_v32 }
 0x38f   :  { %s3533_s19 = scalar_lea.vmem %s3397_s28, 512  ;;  %p3538_p6 = scmp.lt.s32.totalorder %s3397_s28, %s3397_s28 }
 0x390   :  { %p3534_p5 = scmp.ne.s32.totalorder %s3397_s28, %s3533_s19  ;;  %p3539_p7 = scmp.lt.s32.totalorder %s3533_s19, %s3533_s19 }
 0x392   :  { %p3540_p8 = por %p3539_p7, %p3538_p6 }
 0x394   :  { %p3541_p9 = pnand %p3540_p8, %p3534_p5 }
 0x396   :  { %3544 = shalt.err (!%p3541_p9)
}
 0x397   :  { %3399 = dma.vmem_to_hbm [thread:$0]  %s3397_s28, 512, %s4303_s5, [#allocation5]  }
 0x398   :  { %3553 = dma.done.wait [#allocation3], 512  }
 0x399   :  { %3554 = vsyncadd [#allocation3], 4294966784 }
 0x39a   :  { %3555 = dma.done.wait [#allocation5], 512  }
 0x39b   :  { %3556 = vsyncadd [#allocation5], 4294966784 }
 0x39c   :  { %3406 = vsyncpa [#allocation3], 1 }
 0x39d   :  { %3407 = vsyncpa [#allocation5], 1 }

</bundles_post_ra>
